<compile_context>
chip_gen: v7x
topology: tpu7x:2x2x1
jax: 0.10.0
libtpu: 0.0.40
codegen_flags: <defaults>
</compile_context>

<pallas_src>
import numpy as np

import jax
import jax.numpy as jnp
from jax.experimental import pallas as pl
from jax.experimental.pallas import tpu as pltpu


# ----------------------------------------------------------------------------
# Fused kernel: from_rgb -> mbstd -> conv3x3(pad1) -> conv4x4 -> FC -> sigmoid
# All activations are kept in the "wide" (N, HW*ndf) layout so every contraction
# is a plain 2-D matmul (no in-kernel reshapes, no masked lane stores except the
# final (N, 1) output which is inherently 1-wide).
# ----------------------------------------------------------------------------
def _discriminator_fused_kernel(x_ref, wrgb_ref, brgb_ref, m1_ref, mstd_ref,
                                avg_ref, b1_ref, w2_ref, b2_ref, wfc_ref,
                                bfc_ref, o_ref):
    leaky = lambda v: jnp.where(v > 0, v, 0.2 * v)        # nn.LeakyReLU(0.2)

    # from_rgb: 1x1 conv + LeakyReLU, computed directly in (N, HW*ndf) layout
    # via the block-diagonal weight (MXU).
    y0 = jnp.dot(x_ref[...], wrgb_ref[...], preferred_element_type=jnp.float32)
    y0 = leaky(y0 + brgb_ref[...])                        # (N, HW*ndf)

    # MinibatchSTDConcatLayer (averaging='all'): per-(h,w,c) std over the batch
    # (biased var, eps=1e-8), then mean over channels -> one value per (h,w).
    mu = jnp.mean(y0, axis=0, keepdims=True)
    var = jnp.mean((y0 - mu) ** 2, axis=0, keepdims=True)
    std = jnp.sqrt(var + 1e-8)                            # (1, HW*ndf)
    vals = jnp.dot(std, avg_ref[...],
                   preferred_element_type=jnp.float32)    # (1, HW) per-pixel std value

    # conv 3x3, stride 1, pad 1 folded into one dense lane-aligned matmul; the
    # concatenated std channel is equivalent to a rank-1 correction vals @ Mstd.
    y2 = jnp.dot(y0, m1_ref[...], preferred_element_type=jnp.float32)       # (N, HW*ndf)
    y2 = y2 + jnp.dot(vals, mstd_ref[...], preferred_element_type=jnp.float32)
    y2 = leaky(y2 + b1_ref[...])

    # conv 4x4, stride 1, pad 0 on a 4x4 map -> 1x1 output == full contraction.
    y3 = jnp.dot(y2, w2_ref[...], preferred_element_type=jnp.float32)       # (N, ndf)
    y3 = leaky(y3 + b2_ref[...])

    # Flatten -> Linear(ndf, 1) -> Sigmoid, done on VPU (mul) + XLU (lane sum)
    # + EUP (sigmoid) instead of a 1-lane-output MXU matmul.
    logit = jnp.sum(y3 * wfc_ref[...], axis=-1, keepdims=True) + bfc_ref[...]
    o_ref[...] = jax.nn.sigmoid(logit).astype(o_ref.dtype)


# ----------------------------------------------------------------------------
# Input-independent parameter packing (pure host-side weight reshaping, done once)
# ----------------------------------------------------------------------------
def pack_params(params, H=4, W=4):
    assert H == 4 and W == 4, "init discriminator last_block operates on 4x4 maps"
    w_rgb = np.asarray(params["w_rgb"], np.float32)       # (nc, ndf)
    b_rgb = np.asarray(params["b_rgb"], np.float32)       # (ndf,)
    w1 = np.asarray(params["w1"], np.float32)             # (3,3,ndf+1,ndf) HWIO
    b1 = np.asarray(params["b1"], np.float32)
    w2 = np.asarray(params["w2"], np.float32)             # (4,4,ndf,ndf) HWIO
    b2 = np.asarray(params["b2"], np.float32)
    w_fc = np.asarray(params["w_fc"], np.float32)         # (ndf, 1)
    b_fc = np.asarray(params["b_fc"], np.float32)         # (1,)
    nc, ndf = w_rgb.shape
    HW = H * W

    # Shift masks: S[k, p, q] = 1 iff input pixel q feeds output pixel p at tap
    # k = kh*3 + kw of the 3x3 / pad-1 conv (zero padding handled by omission).
    S = np.zeros((9, HW, HW), np.float32)
    for kh in range(3):
        for kw in range(3):
            k = kh * 3 + kw
            for ph in range(H):
                for pw in range(W):
                    qh, qw = ph + kh - 1, pw + kw - 1
                    if 0 <= qh < H and 0 <= qw < W:
                        S[k, ph * W + pw, qh * W + qw] = 1.0

    w1_main = w1[:, :, :ndf, :].reshape(9, ndf, ndf)      # taps on the real channels
    w1_std = w1[:, :, ndf, :].reshape(9, ndf)             # taps on the std channel
    # m1[(q,ci),(p,co)]  = sum_k S[k,p,q] * w1[kh,kw,ci,co]   (exact: <=1 term/entry)
    m1 = np.einsum("kpq,kcd->qcpd", S, w1_main).reshape(HW * ndf, HW * ndf)
    # mstd[q,(p,co)]     = sum_k S[k,p,q] * w1[kh,kw,ndf,co]
    mstd = np.einsum("kpq,kd->qpd", S, w1_std).reshape(HW, HW * ndf)
    # Channel-average matrix for the 'all' mode: vals(1,HW) = std(1,HW*ndf) @ avg
    avg = np.kron(np.eye(HW, dtype=np.float32), np.ones((ndf, 1), np.float32)) / ndf

    return dict(
        meta=(H, W, nc, ndf),
        x_w=jnp.asarray(np.kron(np.eye(HW, dtype=np.float32), w_rgb)),   # (HW*nc, HW*ndf)
        x_b=jnp.asarray(np.tile(b_rgb, HW)[None, :]),                    # (1, HW*ndf)
        m1=jnp.asarray(m1),                                              # (HW*ndf, HW*ndf)
        mstd=jnp.asarray(mstd),                                          # (HW, HW*ndf)
        avg=jnp.asarray(avg),                                            # (HW*ndf, HW)
        b1=jnp.asarray(np.tile(b1, HW)[None, :]),                        # (1, HW*ndf)
        w2=jnp.asarray(w2.reshape(HW * ndf, ndf)),                       # (HW*ndf, ndf)
        b2=jnp.asarray(b2[None, :]),                                     # (1, ndf)
        wfc=jnp.asarray(w_fc.T),                                         # (1, ndf)
        bfc=jnp.asarray(b_fc[None, :]),                                  # (1, 1)
    )


# ----------------------------------------------------------------------------
# Forward pass: one fused pallas_call
# ----------------------------------------------------------------------------
def discriminator_forward(x_nchw, packed):
    H, W, nc, ndf = packed["meta"]
    N = x_nchw.shape[0]
    HW = H * W
    # NCHW -> NHWC -> (N, HW*nc)  (layout plumbing only; channel dim ends up minor)
    x = jnp.transpose(x_nchw, (0, 2, 3, 1)).reshape(N, HW * nc)

    operands = (x, packed["x_w"], packed["x_b"], packed["m1"], packed["mstd"],
                packed["avg"], packed["b1"], packed["w2"], packed["b2"],
                packed["wfc"], packed["bfc"])
    # Every operand is loaded whole (block == full array, trivially legal) and is
    # VMEM-resident for the single grid step.
    in_specs = [pl.BlockSpec(op.shape, lambda i: (0, 0)) for op in operands]

    validity = pl.pallas_call(
        _discriminator_fused_kernel,
        out_shape=jax.ShapeDtypeStruct((N, 1), jnp.float32),
        grid=(1,),
        in_specs=in_specs,
        out_specs=pl.BlockSpec((N, 1), lambda i: (0, 0)),
        compiler_params=pltpu.CompilerParams(
            dimension_semantics=("arbitrary",),
            vmem_limit_bytes=32 * 1024 * 1024),
    )(*operands)
    return validity
    # TODO(synk): cgan/acgan/infogan branches (label embedding / aux head) and the
    # training-time grow_network/flush_network graph surgery are not exercised by
    # the plain-GAN forward pass and are omitted.


# ----------------------------------------------------------------------------
# Deterministic parameter init (shapes from Discriminator.__init__ / last_block)
# ----------------------------------------------------------------------------
def init_params(key, nc, ndf):
    ks = jax.random.split(key, 8)
    s = 0.1
    return dict(
        w_rgb=jax.random.normal(ks[0], (nc, ndf), jnp.float32) * s,
        b_rgb=jax.random.normal(ks[1], (ndf,), jnp.float32) * s,
        w1=jax.random.normal(ks[2], (3, 3, ndf + 1, ndf), jnp.float32) * s,  # HWIO
        b1=jax.random.normal(ks[3], (ndf,), jnp.float32) * s,
        w2=jax.random.normal(ks[4], (4, 4, ndf, ndf), jnp.float32) * s,      # HWIO
        b2=jax.random.normal(ks[5], (ndf,), jnp.float32) * s,
        w_fc=jax.random.normal(ks[6], (ndf, 1), jnp.float32) * s,
        b_fc=jax.random.normal(ks[7], (1,), jnp.float32) * s,
    )


# ----------------------------------------------------------------------------
# Pure-JAX reference (mirrors the PyTorch module) for the correctness check
# ----------------------------------------------------------------------------
def reference_forward(x_nchw, params):
    x = jnp.transpose(x_nchw, (0, 2, 3, 1))
    N, H, W, _ = x.shape
    ndf = params["b_rgb"].shape[0]
    leaky = lambda v: jnp.where(v > 0, v, 0.2 * v)

    y = leaky(jnp.einsum("nhwc,cd->nhwd", x, params["w_rgb"]) + params["b_rgb"])
    std = jnp.sqrt(jnp.var(y, axis=0, keepdims=True) + 1e-8)
    vals = jnp.mean(std, axis=-1, keepdims=True)
    y = jnp.concatenate([y, jnp.broadcast_to(vals, (N, H, W, 1))], axis=-1)
    y = leaky(jax.lax.conv_general_dilated(
        y, params["w1"], (1, 1), ((1, 1), (1, 1)),
        dimension_numbers=("NHWC", "HWIO", "NHWC")) + params["b1"])
    y = leaky(jax.lax.conv_general_dilated(
        y, params["w2"], (1, 1), ((0, 0), (0, 0)),
        dimension_numbers=("NHWC", "HWIO", "NHWC")) + params["b2"])
    feat = jax.nn.sigmoid(y.reshape(N, ndf) @ params["w_fc"] + params["b_fc"])
    return feat[:, 0:1]


if __name__ == "__main__":
    key = jax.random.PRNGKey(0)
    kx, kp = jax.random.split(key)

    N, nc, ndf, res = 2, 3, 32, 4                 # 4x4 input resolution (init model)
    x = jax.random.normal(kx, (N, nc, res, res), jnp.float32)
    params = init_params(kp, nc, ndf)
    packed = pack_params(params, H=res, W=res)    # one-time weight packing

    out = jax.block_until_ready(discriminator_forward(x, packed))
    ref = reference_forward(x, params)

    assert out.shape == (N, 1), out.shape
    assert jnp.allclose(out, ref, atol=1e-4, rtol=1e-4), (out, ref)
    print("KERNEL_OK")
</pallas_src>

<mosaic_0001>
module attributes {stable_mosaic.version = 11 : i64} {
  func.func @_discriminator_fused_kernel(%arg0: i32, %arg1: memref<2x48xf32, #tpu.memory_space<vmem>>, %arg2: memref<48x512xf32, #tpu.memory_space<vmem>>, %arg3: memref<1x512xf32, #tpu.memory_space<vmem>>, %arg4: memref<512x512xf32, #tpu.memory_space<vmem>>, %arg5: memref<16x512xf32, #tpu.memory_space<vmem>>, %arg6: memref<512x16xf32, #tpu.memory_space<vmem>>, %arg7: memref<1x512xf32, #tpu.memory_space<vmem>>, %arg8: memref<512x32xf32, #tpu.memory_space<vmem>>, %arg9: memref<1x32xf32, #tpu.memory_space<vmem>>, %arg10: memref<1x32xf32, #tpu.memory_space<vmem>>, %arg11: memref<1x1xf32, #tpu.memory_space<vmem>>, %arg12: memref<2x1xf32, #tpu.memory_space<vmem>>) attributes {dimension_semantics = [#tpu.dimension_semantics<arbitrary>], iteration_bounds = array<i64: 1>, scalar_prefetch = 0 : i64, scratch_operands = 0 : i64, tpu.core_type = #tpu.core_type<tc>, window_params = [{pipeline_mode = #tpu.pipeline_mode<synchronous>, transform_indices = @transform_0, window_bounds = array<i64: 2, 48>}, {pipeline_mode = #tpu.pipeline_mode<synchronous>, transform_indices = @transform_1, window_bounds = array<i64: 48, 512>}, {pipeline_mode = #tpu.pipeline_mode<synchronous>, transform_indices = @transform_2, window_bounds = array<i64: 1, 512>}, {pipeline_mode = #tpu.pipeline_mode<synchronous>, transform_indices = @transform_3, window_bounds = array<i64: 512, 512>}, {pipeline_mode = #tpu.pipeline_mode<synchronous>, transform_indices = @transform_4, window_bounds = array<i64: 16, 512>}, {pipeline_mode = #tpu.pipeline_mode<synchronous>, transform_indices = @transform_5, window_bounds = array<i64: 512, 16>}, {pipeline_mode = #tpu.pipeline_mode<synchronous>, transform_indices = @transform_6, window_bounds = array<i64: 1, 512>}, {pipeline_mode = #tpu.pipeline_mode<synchronous>, transform_indices = @transform_7, window_bounds = array<i64: 512, 32>}, {pipeline_mode = #tpu.pipeline_mode<synchronous>, transform_indices = @transform_8, window_bounds = array<i64: 1, 32>}, {pipeline_mode = #tpu.pipeline_mode<synchronous>, transform_indices = @transform_9, window_bounds = array<i64: 1, 32>}, {pipeline_mode = #tpu.pipeline_mode<synchronous>, transform_indices = @transform_10, window_bounds = array<i64: 1, 1>}, {pipeline_mode = #tpu.pipeline_mode<synchronous>, transform_indices = @transform_11, window_bounds = array<i64: 2, 1>}]} {
    %c0 = arith.constant 0 : index
    %c0_0 = arith.constant 0 : index
    %0 = vector.load %arg1[%c0, %c0_0] : memref<2x48xf32, #tpu.memory_space<vmem>>, vector<2x48xf32>
    %c0_1 = arith.constant 0 : index
    %c0_2 = arith.constant 0 : index
    %1 = vector.load %arg2[%c0_1, %c0_2] : memref<48x512xf32, #tpu.memory_space<vmem>>, vector<48x512xf32>
    %cst = arith.constant dense<0.000000e+00> : vector<2x512xf32>
    %2 = tpu.matmul %0, %1, %cst {dimension_numbers = #tpu.dot_dimension_numbers<[1], [0], [0], [1], [0, 0, 1, 1], [], []>} : vector<2x48xf32>, vector<48x512xf32>, vector<2x512xf32> -> vector<2x512xf32>
    %c0_3 = arith.constant 0 : index
    %c0_4 = arith.constant 0 : index
    %3 = vector.load %arg3[%c0_3, %c0_4] : memref<1x512xf32, #tpu.memory_space<vmem>>, vector<1x512xf32>
    %4 = vector.broadcast %3 : vector<1x512xf32> to vector<2x512xf32>
    %5 = arith.addf %2, %4 : vector<2x512xf32>
    %cst_5 = arith.constant 0.000000e+00 : f32
    %6 = vector.broadcast %cst_5 : f32 to vector<2x512xf32>
    %7 = arith.cmpf ogt, %5, %6 : vector<2x512xf32>
    %cst_6 = arith.constant 2.000000e-01 : f32
    %8 = vector.broadcast %cst_6 : f32 to vector<2x512xf32>
    %9 = arith.mulf %8, %5 : vector<2x512xf32>
    %10 = arith.select %7, %5, %9 : vector<2x512xi1>, vector<2x512xf32>
    %cst_7 = arith.constant dense<0.000000e+00> : vector<512xf32>
    %11 = vector.multi_reduction <add>, %10, %cst_7 [0] : vector<2x512xf32> to vector<512xf32>
    %12 = vector.shape_cast %11 : vector<512xf32> to vector<1x512xf32>
    %cst_8 = arith.constant 2.000000e+00 : f32
    %13 = vector.broadcast %cst_8 : f32 to vector<1x512xf32>
    %14 = arith.divf %12, %13 : vector<1x512xf32>
    %15 = vector.broadcast %14 : vector<1x512xf32> to vector<2x512xf32>
    %16 = arith.subf %10, %15 : vector<2x512xf32>
    %17 = arith.mulf %16, %16 : vector<2x512xf32>
    %cst_9 = arith.constant dense<0.000000e+00> : vector<512xf32>
    %18 = vector.multi_reduction <add>, %17, %cst_9 [0] : vector<2x512xf32> to vector<512xf32>
    %19 = vector.shape_cast %18 : vector<512xf32> to vector<1x512xf32>
    %cst_10 = arith.constant 2.000000e+00 : f32
    %20 = vector.broadcast %cst_10 : f32 to vector<1x512xf32>
    %21 = arith.divf %19, %20 : vector<1x512xf32>
    %cst_11 = arith.constant 9.99999993E-9 : f32
    %22 = vector.broadcast %cst_11 : f32 to vector<1x512xf32>
    %23 = arith.addf %21, %22 : vector<1x512xf32>
    %24 = math.sqrt %23 : vector<1x512xf32>
    %c0_12 = arith.constant 0 : index
    %c0_13 = arith.constant 0 : index
    %25 = vector.load %arg6[%c0_12, %c0_13] : memref<512x16xf32, #tpu.memory_space<vmem>>, vector<512x16xf32>
    %cst_14 = arith.constant dense<0.000000e+00> : vector<1x16xf32>
    %26 = tpu.matmul %24, %25, %cst_14 {dimension_numbers = #tpu.dot_dimension_numbers<[1], [0], [0], [1], [0, 0, 1, 1], [], []>} : vector<1x512xf32>, vector<512x16xf32>, vector<1x16xf32> -> vector<1x16xf32>
    %c0_15 = arith.constant 0 : index
    %c0_16 = arith.constant 0 : index
    %27 = vector.load %arg4[%c0_15, %c0_16] : memref<512x512xf32, #tpu.memory_space<vmem>>, vector<512x512xf32>
    %cst_17 = arith.constant dense<0.000000e+00> : vector<2x512xf32>
    %28 = tpu.matmul %10, %27, %cst_17 {dimension_numbers = #tpu.dot_dimension_numbers<[1], [0], [0], [1], [0, 0, 1, 1], [], []>} : vector<2x512xf32>, vector<512x512xf32>, vector<2x512xf32> -> vector<2x512xf32>
    %c0_18 = arith.constant 0 : index
    %c0_19 = arith.constant 0 : index
    %29 = vector.load %arg5[%c0_18, %c0_19] : memref<16x512xf32, #tpu.memory_space<vmem>>, vector<16x512xf32>
    %cst_20 = arith.constant dense<0.000000e+00> : vector<1x512xf32>
    %30 = tpu.matmul %26, %29, %cst_20 {dimension_numbers = #tpu.dot_dimension_numbers<[1], [0], [0], [1], [0, 0, 1, 1], [], []>} : vector<1x16xf32>, vector<16x512xf32>, vector<1x512xf32> -> vector<1x512xf32>
    %31 = vector.broadcast %30 : vector<1x512xf32> to vector<2x512xf32>
    %32 = arith.addf %28, %31 : vector<2x512xf32>
    %c0_21 = arith.constant 0 : index
    %c0_22 = arith.constant 0 : index
    %33 = vector.load %arg7[%c0_21, %c0_22] : memref<1x512xf32, #tpu.memory_space<vmem>>, vector<1x512xf32>
    %34 = vector.broadcast %33 : vector<1x512xf32> to vector<2x512xf32>
    %35 = arith.addf %32, %34 : vector<2x512xf32>
    %cst_23 = arith.constant 0.000000e+00 : f32
    %36 = vector.broadcast %cst_23 : f32 to vector<2x512xf32>
    %37 = arith.cmpf ogt, %35, %36 : vector<2x512xf32>
    %cst_24 = arith.constant 2.000000e-01 : f32
    %38 = vector.broadcast %cst_24 : f32 to vector<2x512xf32>
    %39 = arith.mulf %38, %35 : vector<2x512xf32>
    %40 = arith.select %37, %35, %39 : vector<2x512xi1>, vector<2x512xf32>
    %c0_25 = arith.constant 0 : index
    %c0_26 = arith.constant 0 : index
    %41 = vector.load %arg8[%c0_25, %c0_26] : memref<512x32xf32, #tpu.memory_space<vmem>>, vector<512x32xf32>
    %cst_27 = arith.constant dense<0.000000e+00> : vector<2x32xf32>
    %42 = tpu.matmul %40, %41, %cst_27 {dimension_numbers = #tpu.dot_dimension_numbers<[1], [0], [0], [1], [0, 0, 1, 1], [], []>} : vector<2x512xf32>, vector<512x32xf32>, vector<2x32xf32> -> vector<2x32xf32>
    %c0_28 = arith.constant 0 : index
    %c0_29 = arith.constant 0 : index
    %43 = vector.load %arg9[%c0_28, %c0_29] : memref<1x32xf32, #tpu.memory_space<vmem>>, vector<1x32xf32>
    %44 = vector.broadcast %43 : vector<1x32xf32> to vector<2x32xf32>
    %45 = arith.addf %42, %44 : vector<2x32xf32>
    %cst_30 = arith.constant 0.000000e+00 : f32
    %46 = vector.broadcast %cst_30 : f32 to vector<2x32xf32>
    %47 = arith.cmpf ogt, %45, %46 : vector<2x32xf32>
    %cst_31 = arith.constant 2.000000e-01 : f32
    %48 = vector.broadcast %cst_31 : f32 to vector<2x32xf32>
    %49 = arith.mulf %48, %45 : vector<2x32xf32>
    %50 = arith.select %47, %45, %49 : vector<2x32xi1>, vector<2x32xf32>
    %c0_32 = arith.constant 0 : index
    %c0_33 = arith.constant 0 : index
    %51 = vector.load %arg10[%c0_32, %c0_33] : memref<1x32xf32, #tpu.memory_space<vmem>>, vector<1x32xf32>
    %52 = vector.broadcast %51 : vector<1x32xf32> to vector<2x32xf32>
    %53 = arith.mulf %50, %52 : vector<2x32xf32>
    %cst_34 = arith.constant dense<0.000000e+00> : vector<2xf32>
    %54 = vector.multi_reduction <add>, %53, %cst_34 [1] : vector<2x32xf32> to vector<2xf32>
    %55 = vector.shape_cast %54 : vector<2xf32> to vector<2x1xf32>
    %c0_35 = arith.constant 0 : index
    %c0_36 = arith.constant 0 : index
    %56 = vector.load %arg11[%c0_35, %c0_36] : memref<1x1xf32, #tpu.memory_space<vmem>>, vector<1x1xf32>
    %57 = vector.broadcast %56 : vector<1x1xf32> to vector<2x1xf32>
    %58 = arith.addf %55, %57 : vector<2x1xf32>
    %59 = arith.negf %58 : vector<2x1xf32>
    %60 = math.exp %59 : vector<2x1xf32>
    %cst_37 = arith.constant 1.000000e+00 : f32
    %61 = vector.broadcast %cst_37 : f32 to vector<2x1xf32>
    %62 = arith.addf %61, %60 : vector<2x1xf32>
    %63 = arith.divf %61, %62 : vector<2x1xf32>
    %c0_38 = arith.constant 0 : index
    %c0_39 = arith.constant 0 : index
    %64 = vector.load %arg12[%c0_38, %c0_39] : memref<2x1xf32, #tpu.memory_space<vmem>>, vector<2x1xf32>
    tpu.vector_store %arg12[%c0_38, %c0_39], %63 {strides = array<i32>} : memref<2x1xf32, #tpu.memory_space<vmem>>, vector<2x1xf32>,
    return
  }
  func.func @transform_0(%arg0: i32) -> (i32, i32) {
    %c0_i32 = arith.constant 0 : i32
    %c0_i32_0 = arith.constant 0 : i32
    %c0_i32_1 = arith.constant 0 : i32
    return %c0_i32, %c0_i32_0 : i32, i32
  }
  func.func @transform_1(%arg0: i32) -> (i32, i32) {
    %c0_i32 = arith.constant 0 : i32
    %c0_i32_0 = arith.constant 0 : i32
    %c0_i32_1 = arith.constant 0 : i32
    return %c0_i32, %c0_i32_0 : i32, i32
  }
  func.func @transform_2(%arg0: i32) -> (i32, i32) {
    %c0_i32 = arith.constant 0 : i32
    %c0_i32_0 = arith.constant 0 : i32
    %c0_i32_1 = arith.constant 0 : i32
    return %c0_i32, %c0_i32_0 : i32, i32
  }
  func.func @transform_3(%arg0: i32) -> (i32, i32) {
    %c0_i32 = arith.constant 0 : i32
    %c0_i32_0 = arith.constant 0 : i32
    %c0_i32_1 = arith.constant 0 : i32
    return %c0_i32, %c0_i32_0 : i32, i32
  }
  func.func @transform_4(%arg0: i32) -> (i32, i32) {
    %c0_i32 = arith.constant 0 : i32
    %c0_i32_0 = arith.constant 0 : i32
    %c0_i32_1 = arith.constant 0 : i32
    return %c0_i32, %c0_i32_0 : i32, i32
  }
  func.func @transform_5(%arg0: i32) -> (i32, i32) {
    %c0_i32 = arith.constant 0 : i32
    %c0_i32_0 = arith.constant 0 : i32
    %c0_i32_1 = arith.constant 0 : i32
    return %c0_i32, %c0_i32_0 : i32, i32
  }
  func.func @transform_6(%arg0: i32) -> (i32, i32) {
    %c0_i32 = arith.constant 0 : i32
    %c0_i32_0 = arith.constant 0 : i32
    %c0_i32_1 = arith.constant 0 : i32
    return %c0_i32, %c0_i32_0 : i32, i32
  }
  func.func @transform_7(%arg0: i32) -> (i32, i32) {
    %c0_i32 = arith.constant 0 : i32
    %c0_i32_0 = arith.constant 0 : i32
    %c0_i32_1 = arith.constant 0 : i32
    return %c0_i32, %c0_i32_0 : i32, i32
  }
  func.func @transform_8(%arg0: i32) -> (i32, i32) {
    %c0_i32 = arith.constant 0 : i32
    %c0_i32_0 = arith.constant 0 : i32
    %c0_i32_1 = arith.constant 0 : i32
    return %c0_i32, %c0_i32_0 : i32, i32
  }
  func.func @transform_9(%arg0: i32) -> (i32, i32) {
    %c0_i32 = arith.constant 0 : i32
    %c0_i32_0 = arith.constant 0 : i32
    %c0_i32_1 = arith.constant 0 : i32
    return %c0_i32, %c0_i32_0 : i32, i32
  }
  func.func @transform_10(%arg0: i32) -> (i32, i32) {
    %c0_i32 = arith.constant 0 : i32
    %c0_i32_0 = arith.constant 0 : i32
    %c0_i32_1 = arith.constant 0 : i32
    return %c0_i32, %c0_i32_0 : i32, i32
  }
  func.func @transform_11(%arg0: i32) -> (i32, i32) {
    %c0_i32 = arith.constant 0 : i32
    %c0_i32_0 = arith.constant 0 : i32
    %c0_i32_1 = arith.constant 0 : i32
    return %c0_i32, %c0_i32_0 : i32, i32
  }
}

</mosaic_0001>

<bundles_post_ra>
// kernel: tpu_custom_call.1
= control target key start
LH: loop header
LB: loop body
LE: loop exit
PB: predicated region body
PF: predicated region fallthrough
CT: control target
= control target key end

     0   :  { %s2816_s0 = inlined_call_operand.vmem [shape: f32[2,48], index: 0, kind: input, shape index: {}]   ;;  %s2817_s1 = inlined_call_operand.vmem [shape: f32[48,512], index: 1, kind: input, shape index: {}]   ;;  %s2818_s2 = inlined_call_operand.vmem [shape: f32[1,512], index: 2, kind: input, shape index: {}]   ;;  %s2819_s3 = inlined_call_operand.hbm [shape: f32[512,512], index: 3, kind: input, shape index: {}]   ;;  %s2820_s4 = inlined_call_operand.vmem [shape: f32[16,512], index: 4, kind: input, shape index: {}]   ;;  %s2821_s5 = inlined_call_operand.vmem [shape: f32[512,16], index: 5, kind: input, shape index: {}]   ;;  %s2822_s6 = inlined_call_operand.vmem [shape: f32[1,512], index: 6, kind: input, shape index: {}]   ;;  %s2823_s7 = inlined_call_operand.vmem [shape: f32[512,32], index: 7, kind: input, shape index: {}]   ;;  %s2824_s8 = inlined_call_operand.vmem [shape: f32[1,32], index: 8, kind: input, shape index: {}]   ;;  %s2825_s9 = inlined_call_operand.vmem [shape: f32[1,32], index: 9, kind: input, shape index: {}]   ;;  %s2826_s10 = inlined_call_operand.<no memory space> [shape: f32[1,1], index: 10, kind: input, shape index: {}]   ;;  %s2827_s11 = inlined_call_operand.vmem [shape: f32[2,1], index: 11, kind: output, shape index: {}]  }
   0x1   :  { %v16_v0 = vstv %s2826_s10 }
   0x2   :  { %17 = vst [vmem:[#allocation2] sm:$0x1] %v16_v0 }
   0x3   :  { %18 = vsyncpa [#allocation4], 0  ;;  %s2176_s19 = smov [#allocation3]   ;;  %s2152_s23 = scalar_lea.hbm %s2819_s3, 32768 }
   0x4   :  { %s30_s20 = sshll.u32 %s2176_s19, 4  ;;  %p2153_p0 = scmp.ne.s32.totalorder %s2819_s3, %s2152_s23  ;;  %s31_s20 = int_to_ptr.vmem [resolvable:$true] %s30_s20 }
   0x5   :  { %p2156_p1 = scmp.lt.u32.totalorder %s2152_s23, %s2819_s3 }
   0x7   :  { %p2158_p2 = pnand %p2156_p1, %p2153_p0 }
   0x9   :  { %2161 = shalt.err (!%p2158_p2)
}
   0xa   :  { %s2162_s10 = scalar_lea.vmem %s31_s20, 32768  ;;  %p2167_p4 = scmp.lt.s32.totalorder %s31_s20, %s31_s20 }
   0xb   :  { %p2163_p3 = scmp.ne.s32.totalorder %s31_s20, %s2162_s10  ;;  %p2168_p5 = scmp.lt.s32.totalorder %s2162_s10, %s2162_s10 }
   0xd   :  { %p2169_p6 = por %p2168_p5, %p2167_p4 }
   0xf   :  { %p2170_p7 = pnand %p2169_p6, %p2163_p3 }
  0x11   :  { %2173 = shalt.err (!%p2170_p7)
}
  0x12   :  { %s2177_s28 = smov 512   ;;  %s2178_s29 = smov 32  }
  0x13   :  { %36 = dma.hbm_to_vmem [thread:$0]  %s2819_s3, 32768, %s31_s20, [#allocation4], %s2177_s28, %s2177_s28, %s2178_s29  }
  0x14   :  { %2174 = dma.done.wait [#allocation4], 32768  }
  0x15   :  { %2175 = vsyncadd [#allocation4], 4294934528  ;;  %v2179_v1 = vmov 0.0   ;;  %v56_v2 = vld [vmem:[%s2817_s1 + $0x8] sm:$0xff]  ;;  %v58_v4 = vld [vmem:[%s2817_s1 + $0x18] sm:$0xff]  ;;  %vm101_vm0 = vcmask 392192  }
  0x16   :  { %169 = vmatprep.mubr.f32.mxu0 %v2179_v1  ;;  %240 = vmatprep.mubr.f32.mxu1 %v2179_v1  ;;  %v60_v3 = vld [vmem:[%s2817_s1 + $0x28] sm:$0xff]  ;;  %v62_v6 = vld [vmem:[%s2817_s1 + $0x38] sm:$0xff]  ;;  %v55_v7 = vld [vmem:[%s2817_s1] sm:$0xff]  ;;  %vm259_vm2 = vcmask 1041408   ;;  %vm833_vm14 = vcmask 130048  }
  0x17   :  { %v1712_v5 = vpack.c.bf16 %v60_v3, %v56_v2  ;;  %v59_v8 = vld [vmem:[%s2817_s1 + $0x20] sm:$0xff]  ;;  %v1724_v9 = vpack.c.bf16 %v62_v6, %v58_v4  ;;  %v57_v11 = vld [vmem:[%s2817_s1 + $0x10] sm:$0xff]  ;;  %v64_v13 = vld [vmem:[%s2817_s1 + $0x48] sm:$0xff] }
  0x18   :  { %v1714_v10 = vpack.c.bf16 %v59_v8, %v55_v7  ;;  %v61_v12 = vld [vmem:[%s2817_s1 + $0x30] sm:$0xff]  ;;  %v68_v15 = vld [vmem:[%s2817_s1 + $0x68] sm:$0xff]  ;;  %v66_v16 = vld [vmem:[%s2817_s1 + $0x58] sm:$0xff] }
  0x19   :  { %1713 = vmatprep.subr.bf16.mxu0 %v1712_v5  ;;  %v1726_v14 = vpack.c.bf16 %v61_v12, %v57_v11  ;;  %v70_v17 = vld [vmem:[%s2817_s1 + $0x78] sm:$0xff]  ;;  %1725 = vmatprep.subr.bf16.mxu1 %v1724_v9  ;;  %v1716_v18 = vpack.c.bf16 %v68_v15, %v64_v13  ;;  %v63_v20 = vld [vmem:[%s2817_s1 + $0x40] sm:$0xff]  ;;  %v65_v22 = vld [vmem:[%s2817_s1 + $0x50] sm:$0xff] }
  0x1a   :  { %1715 = vmatpush1.bf16.msra.mxu0 %v1714_v10  ;;  %v1728_v19 = vpack.c.bf16 %v70_v17, %v66_v16  ;;  %v67_v21 = vld [vmem:[%s2817_s1 + $0x60] sm:$0xff]  ;;  %v69_v24 = vld [vmem:[%s2817_s1 + $0x70] sm:$0xff]  ;;  %v72_v25 = vld [vmem:[%s2817_s1 + $0x88] sm:$0xff] }
  0x1b   :  { %1727 = vmatpush1.bf16.msra.mxu1 %v1726_v14  ;;  %v1718_v23 = vpack.c.bf16 %v67_v21, %v63_v20  ;;  %v76_v26 = vld [vmem:[%s2817_s1 + $0xa8] sm:$0xff]  ;;  %1717 = vmatprep.subr.bf16.mxu0 %v1716_v18  ;;  %v1730_v27 = vpack.c.bf16 %v69_v24, %v65_v22  ;;  %v74_v29 = vld [vmem:[%s2817_s1 + $0x98] sm:$0xff]  ;;  %v71_v31 = vld [vmem:[%s2817_s1 + $0x80] sm:$0xff] }
  0x1c   :  { %1729 = vmatprep.subr.bf16.mxu1 %v1728_v19  ;;  %v1720_v28 = vpack.c.bf16 %v76_v26, %v72_v25  ;;  %v78_v30 = vld [vmem:[%s2817_s1 + $0xb8] sm:$0xff]  ;;  %v75_v33 = vld [vmem:[%s2817_s1 + $0xa0] sm:$0xff]  ;;  %v73_v34 = vld [vmem:[%s2817_s1 + $0x90] sm:$0xff] }
  0x1d   :  { %v1732_v32 = vpack.c.bf16 %v78_v30, %v74_v29  ;;  %v77_v35 = vld [vmem:[%s2817_s1 + $0xb0] sm:$0xff]  ;;  %v1722_v36 = vpack.c.bf16 %v75_v33, %v71_v31  ;;  %v54_v38 = vld [vmem:[%s2816_s0] sm:$0x3]  ;;  %v382_v40 = vld [vmem:[%s2821_s5 + $0x88] sm:$0xff] }
  0x1e   :  { %1719 = vmatpush1.bf16.msra.mxu0 %v1718_v23  ;;  %v1734_v37 = vpack.c.bf16 %v77_v35, %v73_v34  ;;  %v381_v39 = vld [vmem:[%s2821_s5 + $0x80] sm:$0xff]  ;;  %v414_v43 = vld [vmem:[%s2821_s5 + $0x188] sm:$0xff]  ;;  %v383_v51 = vld [vmem:[%s2821_s5 + $0x90] sm:$0xff] }
  0x1f   :  { %1731 = vmatpush1.bf16.msra.mxu1 %v1730_v27  ;;  %1721 = vmatprep.subr.bf16.mxu0 %v1720_v28  ;;  %v413_v41 = vld [vmem:[%s2821_s5 + $0x180] sm:$0xff]  ;;  %v1736_v42 = vpack.c.bf16 %v382_v40, %v381_v39  ;;  %v366_v45 = vld [vmem:[%s2821_s5 + $0x8] sm:$0xff]  ;;  %v384_v52 = vld [vmem:[%s2821_s5 + $0x98] sm:$0xff] }
  0x20   :  { %1733 = vmatprep.subr.bf16.mxu1 %v1732_v32  ;;  %v365_v44 = vld [vmem:[%s2821_s5] sm:$0xff]  ;;  %v1768_v46 = vpack.c.bf16 %v414_v43, %v413_v41  ;;  %v398_v49 = vld [vmem:[%s2821_s5 + $0x108] sm:$0xff]  ;;  %v415_v53 = vld [vmem:[%s2821_s5 + $0x190] sm:$0xff]  ;;  %v1740_v54 = vpack.c.bf16 %v384_v52, %v383_v51 }
  0x21   :  { %v1738_v47 = vpack.c.bf16 %v366_v45, %v365_v44  ;;  %v397_v48 = vld [vmem:[%s2821_s5 + $0x100] sm:$0xff]  ;;  %v416_v55 = vld [vmem:[%s2821_s5 + $0x198] sm:$0xff]  ;;  %v367_v56 = vld [vmem:[%s2821_s5 + $0x10] sm:$0xff] }
  0x22   :  { %1723 = vmatpush1.bf16.msra.mxu0 %v1722_v36  ;;  %v1770_v50 = vpack.c.bf16 %v398_v49, %v397_v48  ;;  %v368_v57 = vld [vmem:[%s2821_s5 + $0x18] sm:$0xff]  ;;  %v1772_v58 = vpack.c.bf16 %v416_v55, %v415_v53  ;;  %v399_v60 = vld [vmem:[%s2821_s5 + $0x110] sm:$0xff]  ;;  %v385_v63 = vld [vmem:[%s2821_s5 + $0xa0] sm:$0xff] }
  0x23   :  { %1735 = vmatpush1.bf16.msra.mxu1 %v1734_v37  ;;  %1737 = vmatprep.subr.bf16.mxu0 %v1736_v42  ;;  %v1742_v59 = vpack.c.bf16 %v368_v57, %v367_v56  ;;  %v400_v61 = vld [vmem:[%s2821_s5 + $0x118] sm:$0xff]  ;;  %v386_v0 = vld [vmem:[%s2821_s5 + $0xa8] sm:$0xff]  ;;  %v417_v2 = vld [vmem:[%s2821_s5 + $0x1a0] sm:$0xff] }
  0x24   :  { %1769 = vmatprep.subr.bf16.mxu1 %v1768_v46  ;;  %v1774_v62 = vpack.c.bf16 %v400_v61, %v399_v60  ;;  %v1744_v3 = vpack.c.bf16 %v386_v0, %v385_v63  ;;  %v418_v4 = vld [vmem:[%s2821_s5 + $0x1a8] sm:$0xff]  ;;  %v369_v5 = vld [vmem:[%s2821_s5 + $0x20] sm:$0xff]  ;;  %v387_v12 = vld [vmem:[%s2821_s5 + $0xb0] sm:$0xff] }
  0x25   :  { %1564 = vmatmul.mubr.msk.f32.vlgmr.msra.gmra.mrb[0].mxu0 %vm101_vm0, %v54_v38  ;;  %v370_v6 = vld [vmem:[%s2821_s5 + $0x28] sm:$0xff]  ;;  %v1776_v7 = vpack.c.bf16 %v418_v4, %v417_v2  ;;  %v401_v9 = vld [vmem:[%s2821_s5 + $0x120] sm:$0xff]  ;;  %v388_v13 = vld [vmem:[%s2821_s5 + $0xb8] sm:$0xff] }
  0x26   :  { %1565 = vmatmul.mubr.msk.f32.vlgmr.msra.gmra.mrb[0].mxu1 %vm101_vm0, %v54_v38  ;;  %1739 = vmatpush3.bf16.msra.mxu0 %v1738_v47  ;;  %v1746_v8 = vpack.c.bf16 %v370_v6, %v369_v5  ;;  %v402_v10 = vld [vmem:[%s2821_s5 + $0x128] sm:$0xff]  ;;  %v419_v14 = vld [vmem:[%s2821_s5 + $0x1b0] sm:$0xff]  ;;  %v1748_v15 = vpack.c.bf16 %v388_v13, %v387_v12  ;;  %v420_v16 = vld [vmem:[%s2821_s5 + $0x1b8] sm:$0xff] }
  0x27   :  { %1771 = vmatpush3.bf16.msra.mxu1 %v1770_v50  ;;  %1741 = vmatprep.subr.bf16.mxu0 %v1740_v54  ;;  %v1778_v11 = vpack.c.bf16 %v402_v10, %v401_v9  ;;  %v371_v17 = vld [vmem:[%s2821_s5 + $0x30] sm:$0xff]  ;;  %v372_v18 = vld [vmem:[%s2821_s5 + $0x38] sm:$0xff]  ;;  %v1780_v19 = vpack.c.bf16 %v420_v16, %v419_v14  ;;  %v389_v24 = vld [vmem:[%s2821_s5 + $0xc0] sm:$0xff]  ;;  %v81_v9 = vlaneseq }
  0x28   :  { %1773 = vmatprep.subr.bf16.mxu1 %v1772_v58  ;;  %v1750_v20 = vpack.c.bf16 %v372_v18, %v371_v17  ;;  %v403_v21 = vld [vmem:[%s2821_s5 + $0x130] sm:$0xff]  ;;  %v404_v22 = vld [vmem:[%s2821_s5 + $0x138] sm:$0xff]  ;;  %v390_v25 = vld [vmem:[%s2821_s5 + $0xc8] sm:$0xff] }
  0x29   :  { %v1782_v23 = vpack.c.bf16 %v404_v22, %v403_v21  ;;  %v421_v26 = vld [vmem:[%s2821_s5 + $0x1c0] sm:$0xff]  ;;  %v1752_v27 = vpack.c.bf16 %v390_v25, %v389_v24  ;;  %v422_v28 = vld [vmem:[%s2821_s5 + $0x1c8] sm:$0xff]  ;;  %v391_v35 = vld [vmem:[%s2821_s5 + $0xd0] sm:$0xff]  ;;  %v2524_v10 = vshrl.u32 %v81_v9, 7 }
  0x2a   :  { %1743 = vmatpush3.bf16.msra.mxu0 %v1742_v59  ;;  %v373_v29 = vld [vmem:[%s2821_s5 + $0x40] sm:$0xff]  ;;  %v374_v30 = vld [vmem:[%s2821_s5 + $0x48] sm:$0xff]  ;;  %v1784_v31 = vpack.c.bf16 %v422_v28, %v421_v26  ;;  %v392_v37 = vld [vmem:[%s2821_s5 + $0xd8] sm:$0xff] }
  0x2b   :  { %1775 = vmatpush3.bf16.msra.mxu1 %v1774_v62  ;;  %1745 = vmatprep.subr.bf16.mxu0 %v1744_v3  ;;  %v1754_v32 = vpack.c.bf16 %v374_v30, %v373_v29  ;;  %v405_v33 = vld [vmem:[%s2821_s5 + $0x140] sm:$0xff]  ;;  %v406_v34 = vld [vmem:[%s2821_s5 + $0x148] sm:$0xff]  ;;  %v423_v38 = vld [vmem:[%s2821_s5 + $0x1d0] sm:$0xff]  ;;  %v1756_v40 = vpack.c.bf16 %v392_v37, %v391_v35  ;;  %v91_v13 = vsub.s32 2, %v2524_v10  ;;  %v87_v14 = vsub.s32 1, %v2524_v10 }
  0x2c   :  { %1777 = vmatprep.subr.bf16.mxu1 %v1776_v7  ;;  %v1786_v36 = vpack.c.bf16 %v406_v34, %v405_v33  ;;  %v424_v39 = vld [vmem:[%s2821_s5 + $0x1d8] sm:$0xff]  ;;  %v375_v42 = vld [vmem:[%s2821_s5 + $0x50] sm:$0xff]  ;;  %v393_v47 = vld [vmem:[%s2821_s5 + $0xe0] sm:$0xff] }
  0x2d   :  { %v1788_v41 = vpack.c.bf16 %v424_v39, %v423_v38  ;;  %v376_v43 = vld [vmem:[%s2821_s5 + $0x58] sm:$0xff]  ;;  %v407_v44 = vld [vmem:[%s2821_s5 + $0x150] sm:$0xff]  ;;  %v394_v48 = vld [vmem:[%s2821_s5 + $0xe8] sm:$0xff] }
  0x2e   :  { %1747 = vmatpush3.bf16.msra.mxu0 %v1746_v8  ;;  %v1758_v45 = vpack.c.bf16 %v376_v43, %v375_v42  ;;  %v408_v46 = vld [vmem:[%s2821_s5 + $0x158] sm:$0xff]  ;;  %v1760_v50 = vpack.c.bf16 %v394_v48, %v393_v47  ;;  %v425_v51 = vld [vmem:[%s2821_s5 + $0x1e0] sm:$0xff]  ;;  %v426_v52 = vld [vmem:[%s2821_s5 + $0x1e8] sm:$0xff] }
  0x2f   :  { %1779 = vmatpush3.bf16.msra.mxu1 %v1778_v11  ;;  %1749 = vmatprep.subr.bf16.mxu0 %v1748_v15  ;;  %v1790_v49 = vpack.c.bf16 %v408_v46, %v407_v44  ;;  %v377_v53 = vld [vmem:[%s2821_s5 + $0x60] sm:$0xff]  ;;  %v1792_v54 = vpack.c.bf16 %v426_v52, %v425_v51  ;;  %v378_v55 = vld [vmem:[%s2821_s5 + $0x68] sm:$0xff]  ;;  %v395_v59 = vld [vmem:[%s2821_s5 + $0xf0] sm:$0xff]  ;;  %v2527_v11 = vsub.s32 0, %v2524_v10  ;;  %v95_v15 = vsub.s32 3, %v2524_v10 }
  0x30   :  { %1781 = vmatprep.subr.bf16.mxu1 %v1780_v19  ;;  %v409_v56 = vld [vmem:[%s2821_s5 + $0x160] sm:$0xff]  ;;  %v410_v57 = vld [vmem:[%s2821_s5 + $0x168] sm:$0xff]  ;;  %v1762_v58 = vpack.c.bf16 %v378_v55, %v377_v53  ;;  %v396_v60 = vld [vmem:[%s2821_s5 + $0xf8] sm:$0xff] }
  0x31   :  { %v427_v61 = vld [vmem:[%s2821_s5 + $0x1f0] sm:$0xff]  ;;  %v1794_v62 = vpack.c.bf16 %v410_v57, %v409_v56  ;;  %v1764_v63 = vpack.c.bf16 %v396_v60, %v395_v59  ;;  %v428_v0 = vld [vmem:[%s2821_s5 + $0x1f8] sm:$0xff]  ;;  %v79_v12 = vld [vmem:[%s2818_s2] sm:$0xf] }
  0x32   :  { %1751 = vmatpush3.bf16.msra.mxu0 %v1750_v20  ;;  %v379_v2 = vld [vmem:[%s2821_s5 + $0x70] sm:$0xff]  ;;  %v380_v3 = vld [vmem:[%s2821_s5 + $0x78] sm:$0xff]  ;;  %v1796_v4 = vpack.c.bf16 %v428_v0, %v427_v61  ;;  %v84_v16 = vrot.slane %v79_v12, %v2527_v11  ;;  %v92_v17 = vrot.slane %v79_v12, %v91_v13  ;;  %v88_v18 = vrot.slane %v79_v12, %v87_v14 }
  0x33   :  { %1783 = vmatpush3.bf16.msra.mxu1 %v1782_v23  ;;  %1753 = vmatprep.subr.bf16.mxu0 %v1752_v27  ;;  %v411_v5 = vld [vmem:[%s2821_s5 + $0x170] sm:$0xff]  ;;  %v412_v6 = vld [vmem:[%s2821_s5 + $0x178] sm:$0xff]  ;;  %v1766_v7 = vpack.c.bf16 %v380_v3, %v379_v2  ;;  %v96_v19 = vrot.slane %v79_v12, %v95_v15 }
  0x34   :  { %1785 = vmatprep.subr.bf16.mxu1 %v1784_v31  ;;  %v1798_v8 = vpack.c.bf16 %v412_v6, %v411_v5 }
  0x36   :  { %1755 = vmatpush3.bf16.msra.mxu0 %v1754_v32 }
  0x37   :  { %1787 = vmatpush3.bf16.msra.mxu1 %v1786_v36  ;;  %1757 = vmatprep.subr.bf16.mxu0 %v1756_v40 }
  0x38   :  { %1789 = vmatprep.subr.bf16.mxu1 %v1788_v41 }
  0x3a   :  { %1759 = vmatpush3.bf16.msra.mxu0 %v1758_v45 }
  0x3b   :  { %1791 = vmatpush3.bf16.msra.mxu1 %v1790_v49  ;;  %1761 = vmatprep.subr.bf16.mxu0 %v1760_v50 }
  0x3c   :  { %1793 = vmatprep.subr.bf16.mxu1 %v1792_v54 }
  0x3e   :  { %1763 = vmatpush3.bf16.msra.mxu0 %v1762_v58 }
  0x3f   :  { %1795 = vmatpush3.bf16.msra.mxu1 %v1794_v62  ;;  %1765 = vmatprep.subr.bf16.mxu0 %v1764_v63 }
  0x40   :  { %1797 = vmatprep.subr.bf16.mxu1 %v1796_v4 }
  0x42   :  { %1767 = vmatpush3.bf16.msra.mxu0 %v1766_v7 }
  0x43   :  { %1799 = vmatpush3.bf16.msra.mxu1 %v1798_v8 }
  0xf8   :  { %v171_v20 = vpop.f32.mrb[0].mxu0 }
  0xf9   :  { %v172_v21 = vadd.f32 %v171_v20, %v84_v16  ;;  %v242_v22 = vpop.f32.mrb[0].mxu1  ;;  %v173_v23 = vpop.f32.mrb[1].mxu0 }
  0xfa   :  { %v243_v24 = vadd.f32 %v242_v22, %v92_v17  ;;  %v174_v25 = vadd.f32 %v173_v23, %v88_v18  ;;  %v244_v26 = vpop.f32.mrb[1].mxu1 }
  0xfb   :  { %vm247_vm1 = vcmp.gt.f32.partialorder %v172_v21, 0.0  ;;  %v251_v27 = vmul.f32 0.2, %v172_v21  ;;  %v245_v28 = vadd.f32 %v244_v26, %v96_v19 }
  0xfc   :  { %vm249_vm3 = vcmp.gt.f32.partialorder %v243_v24, 0.0  ;;  %v253_v29 = vmul.f32 0.2, %v243_v24  ;;  %vm248_vm4 = vcmp.gt.f32.partialorder %v174_v25, 0.0  ;;  %v252_v30 = vmul.f32 0.2, %v174_v25 }
  0xfd   :  { %v2542_v31 = vsel %vm247_vm1, %v172_v21, %v251_v27  ;;  %vm250_vm5 = vcmp.gt.f32.partialorder %v245_v28, 0.0  ;;  %v254_v32 = vmul.f32 0.2, %v245_v28 }
  0xfe   :  { %v260_v33 = vsel %vm259_vm2, %v2542_v31, 0.0  ;;  %v2546_v34 = vsel %vm249_vm3, %v243_v24, %v253_v29  ;;  %v2548_v35 = vsel %vm248_vm4, %v174_v25, %v252_v30  ;;  %vm1539_vm4 = vcmask 254976  }
  0xff   :  { %v261_v36 = vrot.slane %v260_v33, 4  ;;  %v274_v37 = vsel %vm259_vm2, %v2546_v34, 0.0  ;;  %v267_v38 = vsel %vm259_vm2, %v2548_v35, 0.0  ;;  %v2554_v39 = vsel %vm250_vm5, %v245_v28, %v254_v32 }
 0x100   :  { %v275_v40 = vrot.slane %v274_v37, 4  ;;  %v268_v41 = vrot.slane %v267_v38, 4  ;;  %v281_v42 = vsel %vm259_vm2, %v2554_v39, 0.0  ;;  %vm1557_vm5 = vcmask 1024  }
 0x101   :  { %v262_v43 = vadd.f32 %v261_v36, %v260_v33  ;;  %v282_v44 = vrot.slane %v281_v42, 4 }
 0x102   :  { %v276_v45 = vadd.f32 %v275_v40, %v274_v37  ;;  %v269_v46 = vadd.f32 %v268_v41, %v267_v38 }
 0x103   :  { %v263_v47 = vrot.slane %v262_v43, 2  ;;  %v283_v48 = vadd.f32 %v282_v44, %v281_v42 }
 0x104   :  { %v277_v49 = vrot.slane %v276_v45, 2  ;;  %v270_v50 = vrot.slane %v269_v46, 2 }
 0x105   :  { %v264_v51 = vadd.f32 %v263_v47, %v262_v43  ;;  %v284_v52 = vrot.slane %v283_v48, 2 }
 0x106   :  { %v278_v53 = vadd.f32 %v277_v49, %v276_v45  ;;  %v271_v54 = vadd.f32 %v270_v50, %v269_v46 }
 0x107   :  { %v265_v55 = vrot.slane %v264_v51, 1  ;;  %v285_v56 = vadd.f32 %v284_v52, %v283_v48 }
 0x108   :  { %v279_v57 = vrot.slane %v278_v53, 1  ;;  %v272_v58 = vrot.slane %v271_v54, 1 }
 0x109   :  { %v266_v59 = vadd.f32 %v265_v55, %v264_v51  ;;  %v286_v60 = vrot.slane %v285_v56, 1 }
 0x10a   :  { %v280_v61 = vadd.f32 %v279_v57, %v278_v53  ;;  %v273_v62 = vadd.f32 %v272_v58, %v271_v54 }
 0x10b   :  { %v289_v63 = vmul.f32 0.5, %v266_v59  ;;  %v287_v0 = vadd.f32 %v286_v60, %v285_v56 }
 0x10c   :  { %v291_v2 = vmul.f32 0.5, %v280_v61  ;;  %v290_v3 = vmul.f32 0.5, %v273_v62 }
 0x10d   :  { %v293_v4 = vsub.f32 %v2542_v31, %v289_v63  ;;  %v292_v5 = vmul.f32 0.5, %v287_v0 }
 0x10e   :  { %v295_v6 = vsub.f32 %v2546_v34, %v291_v2  ;;  %v294_v7 = vsub.f32 %v2548_v35, %v290_v3 }
 0x10f   :  { %v297_v8 = vmul.f32 %v293_v4, %v293_v4  ;;  %v296_v9 = vsub.f32 %v2554_v39, %v292_v5 }
 0x110   :  { %v299_v12 = vmul.f32 %v295_v6, %v295_v6  ;;  %v298_v16 = vmul.f32 %v294_v7, %v294_v7 }
 0x111   :  { %v301_v17 = vsel %vm259_vm2, %v297_v8, 0.0  ;;  %v300_v18 = vmul.f32 %v296_v9, %v296_v9 }
 0x112   :  { %v302_v19 = vrot.slane %v301_v17, 4  ;;  %v315_v20 = vsel %vm259_vm2, %v299_v12, 0.0  ;;  %v308_v21 = vsel %vm259_vm2, %v298_v16, 0.0 }
 0x113   :  { %v316_v22 = vrot.slane %v315_v20, 4  ;;  %v309_v23 = vrot.slane %v308_v21, 4  ;;  %v322_v24 = vsel %vm259_vm2, %v300_v18, 0.0 }
 0x114   :  { %v303_v25 = vadd.f32 %v302_v19, %v301_v17  ;;  %v323_v26 = vrot.slane %v322_v24, 4 }
 0x115   :  { %v317_v27 = vadd.f32 %v316_v22, %v315_v20  ;;  %v310_v28 = vadd.f32 %v309_v23, %v308_v21  ;;  %v826_v20 = vld [vmem:[%s2820_s4 + $0x8] sm:$0xff]  ;;  %v828_v22 = vld [vmem:[%s2820_s4 + $0x18] sm:$0xff] }
 0x116   :  { %v304_v29 = vrot.slane %v303_v25, 2  ;;  %v324_v30 = vadd.f32 %v323_v26, %v322_v24  ;;  %v830_v21 = vld [vmem:[%s2820_s4 + $0x28] sm:$0xff]  ;;  %v832_v24 = vld [vmem:[%s2820_s4 + $0x38] sm:$0xff] }
 0x117   :  { %v318_v32 = vrot.slane %v317_v27, 2  ;;  %v311_v33 = vrot.slane %v310_v28, 2  ;;  %v1800_v23 = vpack.c.bf16 %v830_v21, %v826_v20  ;;  %v1804_v26 = vpack.c.bf16 %v832_v24, %v828_v22  ;;  %v596_v20 = vld [vmem:[#allocation3 + $0xd8] sm:$0xff]  ;;  %v593_v24 = vld [vmem:[#allocation3 + $0xc0] sm:$0xff] }
 0x118   :  { %v305_v36 = vadd.f32 %v304_v29, %v303_v25  ;;  %v325_v37 = vrot.slane %v324_v30, 2  ;;  %v829_v25 = vld [vmem:[%s2820_s4 + $0x20] sm:$0xff]  ;;  %v831_v29 = vld [vmem:[%s2820_s4 + $0x30] sm:$0xff] }
 0x119   :  { %v319_v38 = vadd.f32 %v318_v32, %v317_v27  ;;  %v312_v40 = vadd.f32 %v311_v33, %v310_v28  ;;  %v827_v28 = vld [vmem:[%s2820_s4 + $0x10] sm:$0xff]  ;;  %1801 = vmatprep.subr.bf16.mxu0 %v1800_v23  ;;  %1805 = vmatprep.subr.bf16.mxu1 %v1804_v26  ;;  %v600_v21 = vld [vmem:[#allocation3 + $0xf8] sm:$0xff] }
 0x11a   :  { %v306_v41 = vrot.slane %v305_v36, 1  ;;  %v326_v42 = vadd.f32 %v325_v37, %v324_v30  ;;  %v1806_v30 = vpack.c.bf16 %v831_v29, %v827_v28  ;;  %v570_v32 = vld [vmem:[#allocation3 + $0x8] sm:$0xff]  ;;  %v595_v26 = vld [vmem:[#allocation3 + $0xd0] sm:$0xff] }
 0x11b   :  { %v320_v43 = vrot.slane %v319_v38, 1  ;;  %v313_v44 = vrot.slane %v312_v40, 1  ;;  %v574_v33 = vld [vmem:[#allocation3 + $0x28] sm:$0xff] }
 0x11c   :  { %v307_v45 = vadd.f32 %v306_v41, %v305_v36  ;;  %v327_v46 = vrot.slane %v326_v42, 1  ;;  %v572_v36 = vld [vmem:[#allocation3 + $0x18] sm:$0xff]  ;;  %v1808_v37 = vpack.c.bf16 %v574_v33, %v570_v32  ;;  %v602_v28 = vld [vmem:[#allocation3 + $0x108] sm:$0xff] }
 0x11d   :  { %v321_v47 = vadd.f32 %v320_v43, %v319_v38  ;;  %v314_v48 = vadd.f32 %v313_v44, %v312_v40  ;;  %v576_v38 = vld [vmem:[#allocation3 + $0x38] sm:$0xff]  ;;  %v606_v29 = vld [vmem:[#allocation3 + $0x128] sm:$0xff] }
 0x11e   :  { %v329_v49 = vmul.f32 0.5, %v307_v45  ;;  %v328_v50 = vadd.f32 %v327_v46, %v326_v42  ;;  %v1936_v40 = vpack.c.bf16 %v576_v38, %v572_v36  ;;  %v569_v42 = vld [vmem:[#allocation3] sm:$0xff]  ;;  %v571_v46 = vld [vmem:[#allocation3 + $0x10] sm:$0xff]  ;;  %v608_v32 = vld [vmem:[#allocation3 + $0x138] sm:$0xff] }
 0x11f   :  { %v331_v51 = vmul.f32 0.5, %v321_v47  ;;  %v330_v52 = vmul.f32 0.5, %v314_v48  ;;  %v573_v45 = vld [vmem:[#allocation3 + $0x20] sm:$0xff]  ;;  %v575_v47 = vld [vmem:[#allocation3 + $0x30] sm:$0xff] }
 0x120   :  { %v333_v53 = vadd.f32 1e-08, %v329_v49  ;;  %v332_v54 = vmul.f32 0.5, %v328_v50  ;;  %v578_v50 = vld [vmem:[#allocation3 + $0x48] sm:$0xff]  ;;  %v605_v38 = vld [vmem:[#allocation3 + $0x120] sm:$0xff] }
 0x121   :  { %v335_v55 = vadd.f32 1e-08, %v331_v51  ;;  %v334_v56 = vadd.f32 1e-08, %v330_v52  ;;  %v582_v52 = vld [vmem:[#allocation3 + $0x68] sm:$0xff] }
 0x122   :  { %v336_v57 = vadd.f32 1e-08, %v332_v54  ;;  %2140 = vrsqrt.f32 %v333_v53  ;;  %vm339_vm6 = vcmp.eq.f32.partialorder %v333_v53, inf  ;;  %vm341_vm7 = vcmp.eq.f32.partialorder %v333_v53, 0.0  ;;  %v584_v54 = vld [vmem:[#allocation3 + $0x78] sm:$0xff] }
 0x123   :  { %2142 = vrsqrt.f32 %v334_v56  ;;  %vm346_vm8 = vcmp.eq.f32.partialorder %v334_v56, inf  ;;  %vm348_vm9 = vcmp.eq.f32.partialorder %v334_v56, 0.0  ;;  %v349_v63 = vand.u32 2147483648, %v334_v56 }
 0x124   :  { %2144 = vrsqrt.f32 %v336_v57  ;;  %vm360_vm10 = vcmp.eq.f32.partialorder %v336_v57, inf  ;;  %vm362_vm11 = vcmp.eq.f32.partialorder %v336_v57, 0.0  ;;  %v363_v5 = vand.u32 2147483648, %v336_v57 }
 0x125   :  { %2146 = vrsqrt.f32 %v335_v55  ;;  %v342_v6 = vand.u32 2147483648, %v333_v53  ;;  %vm353_vm12 = vcmp.eq.f32.partialorder %v335_v55, inf  ;;  %v356_v12 = vand.u32 2147483648, %v335_v55 }
 0x126   :  { %vm355_vm13 = vcmp.eq.f32.partialorder %v335_v55, 0.0 }
 0x12c   :  { %v2141_v58 = vpop.eup %2140 }
 0x12d   :  { %v2143_v59 = vpop.eup %2142  ;;  %v338_v60 = vmul.f32 %v2141_v58, %v333_v53  ;;  %v581_v58 = vld [vmem:[#allocation3 + $0x60] sm:$0xff] }
 0x12e   :  { %v2145_v61 = vpop.eup %2144  ;;  %v345_v62 = vmul.f32 %v2143_v59, %v334_v56 }
 0x12f   :  { %v2147_v0 = vpop.eup %2146  ;;  %v359_v2 = vmul.f32 %v2145_v61, %v336_v57  ;;  %v340_v3 = vsel %vm339_vm6, %v333_v53, %v338_v60  ;;  %v580_v53 = vld [vmem:[#allocation3 + $0x58] sm:$0xff]  ;;  %v579_v60 = vld [vmem:[#allocation3 + $0x50] sm:$0xff] }
 0x130   :  { %v347_v4 = vsel %vm346_vm8, %v334_v56, %v345_v62  ;;  %v352_v7 = vmul.f32 %v2147_v0, %v335_v55  ;;  %v343_v17 = vsel %vm341_vm7, %v342_v6, %v340_v3  ;;  %v1938_v56 = vpack.c.bf16 %v575_v47, %v571_v46  ;;  %v583_v61 = vld [vmem:[#allocation3 + $0x70] sm:$0xff]  ;;  %v586_v62 = vld [vmem:[#allocation3 + $0x88] sm:$0xff]  ;;  %v588_v3 = vld [vmem:[#allocation3 + $0x98] sm:$0xff] }
 0x131   :  { %v350_v8 = vsel %vm348_vm9, %v349_v63, %v347_v4  ;;  %v361_v9 = vsel %vm360_vm10, %v336_v57, %v359_v2  ;;  %v577_v57 = vld [vmem:[#allocation3 + $0x40] sm:$0xff]  ;;  %v1812_v63 = vpack.c.bf16 %v582_v52, %v578_v50  ;;  %v1940_v0 = vpack.c.bf16 %v584_v54, %v580_v53  ;;  %v590_v2 = vld [vmem:[#allocation3 + $0xa8] sm:$0xff]  ;;  %v592_v4 = vld [vmem:[#allocation3 + $0xb8] sm:$0xff] }
 0x132   :  { %493 = vmatprep.mubr.f32.mxu0 %v350_v8  ;;  %v364_v16 = vsel %vm362_vm11, %v363_v5, %v361_v9  ;;  %v354_v18 = vsel %vm353_vm12, %v335_v55, %v352_v7  ;;  %v1810_v55 = vpack.c.bf16 %v573_v45, %v569_v42  ;;  %v1814_v5 = vpack.c.bf16 %v581_v58, %v577_v57  ;;  %v585_v7 = vld [vmem:[#allocation3 + $0x80] sm:$0xff]  ;;  %v603_v42 = vld [vmem:[#allocation3 + $0x110] sm:$0xff]  ;;  %v614_v45 = vld [vmem:[#allocation3 + $0x168] sm:$0xff] }
 0x133   :  { %563 = vmatprep.mubr.f32.mxu1 %v364_v16  ;;  %494 = vmatmul.mubr.f32.vlgmr.msra.gmra.mrb[2].mxu0 %v343_v17  ;;  %v357_v19 = vsel %vm355_vm13, %v356_v12, %v354_v18  ;;  %v1942_v6 = vpack.c.bf16 %v583_v61, %v579_v60  ;;  %v589_v8 = vld [vmem:[#allocation3 + $0xa0] sm:$0xff]  ;;  %v1816_v9 = vpack.c.bf16 %v590_v2, %v586_v62  ;;  %v587_v16 = vld [vmem:[#allocation3 + $0x90] sm:$0xff]  ;;  %v594_v18 = vld [vmem:[#allocation3 + $0xc8] sm:$0xff] }
 0x134   :  { %564 = vmatmul.mubr.f32.vlgmr.msra.gmra.mrb[2].mxu1 %v357_v19  ;;  %901 = vmatprep.mubr.f32.mxu0 %v2179_v1  ;;  %v1944_v12 = vpack.c.bf16 %v592_v4, %v588_v3  ;;  %v591_v17 = vld [vmem:[#allocation3 + $0xb0] sm:$0xff]  ;;  %v598_v19 = vld [vmem:[#allocation3 + $0xe8] sm:$0xff]  ;;  %v1818_v22 = vpack.c.bf16 %v589_v8, %v585_v7  ;;  %v612_v46 = vld [vmem:[#allocation3 + $0x158] sm:$0xff] }
 0x135   :  { %972 = vmatprep.mubr.f32.mxu1 %v2179_v1  ;;  %v825_v1 = vld [vmem:[%s2820_s4] sm:$0xff]  ;;  %1807 = vmatpush1.bf16.msra.mxu1 %v1806_v30  ;;  %v1946_v23 = vpack.c.bf16 %v591_v17, %v587_v16  ;;  %v611_v54 = vld [vmem:[#allocation3 + $0x150] sm:$0xff]  ;;  %v622_v57 = vld [vmem:[#allocation3 + $0x1a8] sm:$0xff] }
 0x136   :  { %v1802_v27 = vpack.c.bf16 %v829_v25, %v825_v1  ;;  %1937 = vmatprep.subr.bf16.mxu1 %v1936_v40  ;;  %v597_v1 = vld [vmem:[#allocation3 + $0xe0] sm:$0xff]  ;;  %v1820_v25 = vpack.c.bf16 %v598_v19, %v594_v18  ;;  %v604_v30 = vld [vmem:[#allocation3 + $0x118] sm:$0xff]  ;;  %v1824_v40 = vpack.c.bf16 %v606_v29, %v602_v28  ;;  %v619_v3 = vld [vmem:[#allocation3 + $0x190] sm:$0xff] }
 0x137   :  { %v1822_v33 = vpack.c.bf16 %v597_v1, %v593_v24  ;;  %v616_v47 = vld [vmem:[#allocation3 + $0x178] sm:$0xff]  ;;  %v609_v50 = vld [vmem:[#allocation3 + $0x140] sm:$0xff]  ;;  %v623_v4 = vld [vmem:[#allocation3 + $0x1b0] sm:$0xff] }
 0x138   :  { %1803 = vmatpush1.bf16.msra.mxu0 %v1802_v27  ;;  %v599_v27 = vld [vmem:[#allocation3 + $0xf0] sm:$0xff]  ;;  %v1956_v53 = vpack.c.bf16 %v616_v47, %v612_v46  ;;  %v620_v58 = vld [vmem:[#allocation3 + $0x198] sm:$0xff]  ;;  %v617_v62 = vld [vmem:[#allocation3 + $0x180] sm:$0xff] }
 0x139   :  { %1809 = vmatprep.subr.bf16.mxu0 %v1808_v37  ;;  %v1950_v36 = vpack.c.bf16 %v599_v27, %v595_v26  ;;  %v601_v37 = vld [vmem:[#allocation3 + $0x100] sm:$0xff]  ;;  %v628_v7 = vld [vmem:[#allocation3 + $0x1d8] sm:$0xff]  ;;  %v643_v46 = vld [vmem:[#allocation3 + $0x250] sm:$0xff] }
 0x13a   :  { %v632_v8 = vld [vmem:[#allocation3 + $0x1f8] sm:$0xff]  ;;  %v625_v16 = vld [vmem:[#allocation3 + $0x1c0] sm:$0xff]  ;;  %v647_v47 = vld [vmem:[#allocation3 + $0x270] sm:$0xff] }
 0x13b   :  { %v629_v17 = vld [vmem:[#allocation3 + $0x1e0] sm:$0xff]  ;;  %v1964_v19 = vpack.c.bf16 %v632_v8, %v628_v7  ;;  %v636_v24 = vld [vmem:[#allocation3 + $0x218] sm:$0xff]  ;;  %v659_v7 = vld [vmem:[#allocation3 + $0x2d0] sm:$0xff] }
 0x13c   :  { %v640_v1 = vld [vmem:[#allocation3 + $0x238] sm:$0xff]  ;;  %v633_v26 = vld [vmem:[#allocation3 + $0x200] sm:$0xff]  ;;  %v663_v8 = vld [vmem:[#allocation3 + $0x2f0] sm:$0xff] }
 0x13d   :  { %v637_v27 = vld [vmem:[#allocation3 + $0x220] sm:$0xff]  ;;  %v1968_v29 = vpack.c.bf16 %v640_v1, %v636_v24  ;;  %v667_v24 = vld [vmem:[#allocation3 + $0x310] sm:$0xff] }
 0x13e   :  { %v671_v1 = vld [vmem:[#allocation3 + $0x330] sm:$0xff] }
 0x206   :  { %v1604_v41 = vpop.f32.mrb[2].mxu0 }
 0x207   :  { %v1639_v43 = vpop.f32.mrb[2].mxu1  ;;  %v1605_v44 = vpop.f32.mrb[3].mxu0 }
 0x208   :  { %v1606_v48 = vadd.f32 %v1605_v44, %v1604_v41  ;;  %v1640_v49 = vpop.f32.mrb[3].mxu1  ;;  %v1952_v41 = vpack.c.bf16 %v608_v32, %v604_v30  ;;  %v610_v44 = vld [vmem:[#allocation3 + $0x148] sm:$0xff]  ;;  %v635_v30 = vld [vmem:[#allocation3 + $0x210] sm:$0xff] }
 0x209   :  { %v1641_v51 = vadd.f32 %v1640_v49, %v1639_v43  ;;  %v607_v43 = vld [vmem:[#allocation3 + $0x130] sm:$0xff]  ;;  %v1828_v52 = vpack.c.bf16 %v614_v45, %v610_v44 }
 0x20a   :  { %v1954_v49 = vpack.c.bf16 %v607_v43, %v603_v42  ;;  %v639_v32 = vld [vmem:[#allocation3 + $0x230] sm:$0xff]  ;;  %v641_v42 = vld [vmem:[#allocation3 + $0x240] sm:$0xff] }
 0x20b   :  { %v566_v59 = vadd.f32 %v1641_v51, %v1606_v48  ;;  %v1826_v48 = vpack.c.bf16 %v605_v38, %v601_v37  ;;  %v613_v51 = vld [vmem:[#allocation3 + $0x160] sm:$0xff]  ;;  %v644_v37 = vld [vmem:[#allocation3 + $0x258] sm:$0xff] }
 0x20c   :  { %v1830_v60 = vpack.c.bf16 %v613_v51, %v609_v50  ;;  %v648_v38 = vld [vmem:[#allocation3 + $0x278] sm:$0xff]  ;;  %v645_v43 = vld [vmem:[#allocation3 + $0x260] sm:$0xff] }
 0x20d   :  { %1566 = vmatmul.mubr.msk.f32.vlgmr.msra.gmra.mrb[4].mxu0 %vm833_vm14, %v566_v59  ;;  %1567 = vmatmul.mubr.msk.f32.vlgmr.msra.gmra.mrb[4].mxu1 %vm833_vm14, %v566_v59  ;;  %v624_v59 = vld [vmem:[#allocation3 + $0x1b8] sm:$0xff]  ;;  %v1972_v45 = vpack.c.bf16 %v648_v38, %v644_v37  ;;  %v675_v37 = vld [vmem:[#allocation3 + $0x350] sm:$0xff] }
 0x20e   :  { %1811 = vmatpush1.bf16.msra.mxu0 %v1810_v55  ;;  %1939 = vmatpush1.bf16.msra.mxu1 %v1938_v56  ;;  %v615_v55 = vld [vmem:[#allocation3 + $0x170] sm:$0xff]  ;;  %v618_v56 = vld [vmem:[#allocation3 + $0x188] sm:$0xff]  ;;  %v1960_v2 = vpack.c.bf16 %v624_v59, %v620_v58  ;;  %v652_v50 = vld [vmem:[#allocation3 + $0x298] sm:$0xff] }
 0x20f   :  { %1059 = vmatprep.mubr.f32.mxu0 %v2548_v35  ;;  %1201 = vmatprep.mubr.f32.mxu1 %v2548_v35  ;;  %v1948_v35 = vpack.c.bf16 %v600_v21, %v596_v20  ;;  %v1958_v61 = vpack.c.bf16 %v615_v55, %v611_v54  ;;  %v627_v20 = vld [vmem:[#allocation3 + $0x1d0] sm:$0xff]  ;;  %v656_v51 = vld [vmem:[#allocation3 + $0x2b8] sm:$0xff]  ;;  %v649_v54 = vld [vmem:[#allocation3 + $0x280] sm:$0xff] }
 0x210   :  { %1813 = vmatprep.subr.bf16.mxu0 %v1812_v63  ;;  %1941 = vmatprep.subr.bf16.mxu1 %v1940_v0  ;;  %v621_v63 = vld [vmem:[#allocation3 + $0x1a0] sm:$0xff]  ;;  %v1832_v0 = vpack.c.bf16 %v622_v57, %v618_v56  ;;  %v631_v21 = vld [vmem:[#allocation3 + $0x1f0] sm:$0xff]  ;;  %v1976_v57 = vpack.c.bf16 %v656_v51, %v652_v50 }
 0x211   :  { %v653_v55 = vld [vmem:[#allocation3 + $0x2a0] sm:$0xff]  ;;  %v651_v58 = vld [vmem:[#allocation3 + $0x290] sm:$0xff] }
 0x212   :  { %1815 = vmatpush1.bf16.msra.mxu0 %v1814_v5  ;;  %1943 = vmatpush1.bf16.msra.mxu1 %v1942_v6  ;;  %v626_v5 = vld [vmem:[#allocation3 + $0x1c8] sm:$0xff]  ;;  %v655_v59 = vld [vmem:[#allocation3 + $0x2b0] sm:$0xff] }
 0x213   :  { %1817 = vmatprep.subr.bf16.mxu0 %v1816_v9  ;;  %1945 = vmatprep.subr.bf16.mxu1 %v1944_v12  ;;  %v630_v6 = vld [vmem:[#allocation3 + $0x1e8] sm:$0xff]  ;;  %v1834_v9 = vpack.c.bf16 %v621_v63, %v617_v62  ;;  %v1962_v12 = vpack.c.bf16 %v623_v4, %v619_v3  ;;  %v660_v62 = vld [vmem:[#allocation3 + $0x2d8] sm:$0xff]  ;;  %v657_v3 = vld [vmem:[#allocation3 + $0x2c0] sm:$0xff] }
 0x214   :  { %v1836_v18 = vpack.c.bf16 %v630_v6, %v626_v5  ;;  %v664_v63 = vld [vmem:[#allocation3 + $0x2f8] sm:$0xff]  ;;  %v661_v4 = vld [vmem:[#allocation3 + $0x2e0] sm:$0xff]  ;;  %v679_v38 = vld [vmem:[#allocation3 + $0x370] sm:$0xff] }
 0x215   :  { %v1980_v6 = vpack.c.bf16 %v664_v63, %v660_v62  ;;  %v683_v50 = vld [vmem:[#allocation3 + $0x390] sm:$0xff] }
 0x216   :  { %1819 = vmatpush1.bf16.msra.mxu0 %v1818_v22  ;;  %1947 = vmatpush1.bf16.msra.mxu1 %v1946_v23  ;;  %v634_v22 = vld [vmem:[#allocation3 + $0x208] sm:$0xff]  ;;  %v687_v51 = vld [vmem:[#allocation3 + $0x3b0] sm:$0xff] }
 0x217   :  { %1821 = vmatprep.subr.bf16.mxu0 %v1820_v25  ;;  %1949 = vmatprep.subr.bf16.mxu1 %v1948_v35  ;;  %v638_v23 = vld [vmem:[#allocation3 + $0x228] sm:$0xff]  ;;  %v1838_v25 = vpack.c.bf16 %v629_v17, %v625_v16  ;;  %v1966_v35 = vpack.c.bf16 %v631_v21, %v627_v20  ;;  %v668_v16 = vld [vmem:[#allocation3 + $0x318] sm:$0xff]  ;;  %v665_v20 = vld [vmem:[#allocation3 + $0x300] sm:$0xff] }
 0x218   :  { %v1840_v28 = vpack.c.bf16 %v638_v23, %v634_v22  ;;  %v672_v17 = vld [vmem:[#allocation3 + $0x338] sm:$0xff]  ;;  %v669_v21 = vld [vmem:[#allocation3 + $0x320] sm:$0xff]  ;;  %v691_v62 = vld [vmem:[#allocation3 + $0x3d0] sm:$0xff] }
 0x219   :  { %v1984_v23 = vpack.c.bf16 %v672_v17, %v668_v16  ;;  %v695_v63 = vld [vmem:[#allocation3 + $0x3f0] sm:$0xff] }
 0x21a   :  { %1823 = vmatpush1.bf16.msra.mxu0 %v1822_v33  ;;  %1951 = vmatpush1.bf16.msra.mxu1 %v1950_v36  ;;  %v642_v33 = vld [vmem:[#allocation3 + $0x248] sm:$0xff]  ;;  %v699_v16 = vld [vmem:[#allocation3 + $0x410] sm:$0xff] }
 0x21b   :  { %1825 = vmatprep.subr.bf16.mxu0 %v1824_v40  ;;  %1953 = vmatprep.subr.bf16.mxu1 %v1952_v41  ;;  %v646_v36 = vld [vmem:[#allocation3 + $0x268] sm:$0xff]  ;;  %v1842_v40 = vpack.c.bf16 %v637_v27, %v633_v26  ;;  %v1970_v41 = vpack.c.bf16 %v639_v32, %v635_v30  ;;  %v676_v26 = vld [vmem:[#allocation3 + $0x358] sm:$0xff]  ;;  %v673_v30 = vld [vmem:[#allocation3 + $0x340] sm:$0xff] }
 0x21c   :  { %v1844_v44 = vpack.c.bf16 %v646_v36, %v642_v33  ;;  %v680_v27 = vld [vmem:[#allocation3 + $0x378] sm:$0xff]  ;;  %v677_v32 = vld [vmem:[#allocation3 + $0x360] sm:$0xff]  ;;  %v703_v17 = vld [vmem:[#allocation3 + $0x430] sm:$0xff] }
 0x21d   :  { %v1988_v36 = vpack.c.bf16 %v680_v27, %v676_v26  ;;  %v711_v27 = vld [vmem:[#allocation3 + $0x470] sm:$0xff] }
 0x21e   :  { %1827 = vmatpush1.bf16.msra.mxu0 %v1826_v48  ;;  %1955 = vmatpush1.bf16.msra.mxu1 %v1954_v49  ;;  %v650_v48 = vld [vmem:[#allocation3 + $0x288] sm:$0xff] }
 0x21f   :  { %1829 = vmatprep.subr.bf16.mxu0 %v1828_v52  ;;  %1957 = vmatprep.subr.bf16.mxu1 %v1956_v53  ;;  %v654_v49 = vld [vmem:[#allocation3 + $0x2a8] sm:$0xff]  ;;  %v1846_v52 = vpack.c.bf16 %v645_v43, %v641_v42  ;;  %v1974_v53 = vpack.c.bf16 %v647_v47, %v643_v46  ;;  %v684_v42 = vld [vmem:[#allocation3 + $0x398] sm:$0xff]  ;;  %v681_v46 = vld [vmem:[#allocation3 + $0x380] sm:$0xff] }
 0x220   :  { %v1848_v56 = vpack.c.bf16 %v654_v49, %v650_v48  ;;  %v688_v43 = vld [vmem:[#allocation3 + $0x3b8] sm:$0xff]  ;;  %v685_v47 = vld [vmem:[#allocation3 + $0x3a0] sm:$0xff] }
 0x221   :  { %v1992_v49 = vpack.c.bf16 %v688_v43, %v684_v42  ;;  %v719_v43 = vld [vmem:[#allocation3 + $0x4b0] sm:$0xff] }
 0x222   :  { %1831 = vmatpush1.bf16.msra.mxu0 %v1830_v60  ;;  %1959 = vmatpush1.bf16.msra.mxu1 %v1958_v61  ;;  %v658_v60 = vld [vmem:[#allocation3 + $0x2c8] sm:$0xff] }
 0x223   :  { %1833 = vmatprep.subr.bf16.mxu0 %v1832_v0  ;;  %1961 = vmatprep.subr.bf16.mxu1 %v1960_v2  ;;  %v662_v61 = vld [vmem:[#allocation3 + $0x2e8] sm:$0xff]  ;;  %v1850_v0 = vpack.c.bf16 %v653_v55, %v649_v54  ;;  %v1978_v2 = vpack.c.bf16 %v655_v59, %v651_v58  ;;  %v692_v54 = vld [vmem:[#allocation3 + $0x3d8] sm:$0xff]  ;;  %v689_v58 = vld [vmem:[#allocation3 + $0x3c0] sm:$0xff] }
 0x224   :  { %v1852_v5 = vpack.c.bf16 %v662_v61, %v658_v60  ;;  %v696_v55 = vld [vmem:[#allocation3 + $0x3f8] sm:$0xff]  ;;  %v693_v59 = vld [vmem:[#allocation3 + $0x3e0] sm:$0xff] }
 0x225   :  { %v1996_v61 = vpack.c.bf16 %v696_v55, %v692_v54  ;;  %v730_v54 = vld [vmem:[#allocation3 + $0x508] sm:$0xff] }
 0x226   :  { %1835 = vmatpush1.bf16.msra.mxu0 %v1834_v9  ;;  %1963 = vmatpush1.bf16.msra.mxu1 %v1962_v12  ;;  %v666_v9 = vld [vmem:[#allocation3 + $0x308] sm:$0xff] }
 0x227   :  { %1837 = vmatprep.subr.bf16.mxu0 %v1836_v18  ;;  %1965 = vmatprep.subr.bf16.mxu1 %v1964_v19  ;;  %v670_v12 = vld [vmem:[#allocation3 + $0x328] sm:$0xff]  ;;  %v1854_v18 = vpack.c.bf16 %v661_v4, %v657_v3  ;;  %v1982_v19 = vpack.c.bf16 %v663_v8, %v659_v7  ;;  %v700_v3 = vld [vmem:[#allocation3 + $0x418] sm:$0xff] }
 0x228   :  { %v1856_v22 = vpack.c.bf16 %v670_v12, %v666_v9  ;;  %v704_v4 = vld [vmem:[#allocation3 + $0x438] sm:$0xff]  ;;  %v697_v9 = vld [vmem:[#allocation3 + $0x400] sm:$0xff]  ;;  %v734_v55 = vld [vmem:[#allocation3 + $0x528] sm:$0xff] }
 0x229   :  { %v2000_v8 = vpack.c.bf16 %v704_v4, %v700_v3  ;;  %v701_v12 = vld [vmem:[#allocation3 + $0x420] sm:$0xff]  ;;  %v738_v3 = vld [vmem:[#allocation3 + $0x548] sm:$0xff] }
 0x22a   :  { %1839 = vmatpush1.bf16.msra.mxu0 %v1838_v25  ;;  %1967 = vmatpush1.bf16.msra.mxu1 %v1966_v35  ;;  %v674_v25 = vld [vmem:[#allocation3 + $0x348] sm:$0xff] }
 0x22b   :  { %1841 = vmatprep.subr.bf16.mxu0 %v1840_v28  ;;  %1969 = vmatprep.subr.bf16.mxu1 %v1968_v29  ;;  %v678_v35 = vld [vmem:[#allocation3 + $0x368] sm:$0xff]  ;;  %v1858_v28 = vpack.c.bf16 %v669_v21, %v665_v20  ;;  %v1986_v29 = vpack.c.bf16 %v671_v1, %v667_v24  ;;  %v708_v20 = vld [vmem:[#allocation3 + $0x458] sm:$0xff]  ;;  %v705_v24 = vld [vmem:[#allocation3 + $0x440] sm:$0xff] }
 0x22c   :  { %v1860_v33 = vpack.c.bf16 %v678_v35, %v674_v25  ;;  %v712_v21 = vld [vmem:[#allocation3 + $0x478] sm:$0xff]  ;;  %v709_v1 = vld [vmem:[#allocation3 + $0x460] sm:$0xff]  ;;  %v707_v25 = vld [vmem:[#allocation3 + $0x450] sm:$0xff] }
 0x22d   :  { %v2004_v26 = vpack.c.bf16 %v712_v21, %v708_v20  ;;  %v742_v4 = vld [vmem:[#allocation3 + $0x568] sm:$0xff] }
 0x22e   :  { %1843 = vmatpush1.bf16.msra.mxu0 %v1842_v40  ;;  %1971 = vmatpush1.bf16.msra.mxu1 %v1970_v41  ;;  %v682_v40 = vld [vmem:[#allocation3 + $0x388] sm:$0xff] }
 0x22f   :  { %1845 = vmatprep.subr.bf16.mxu0 %v1844_v44  ;;  %1973 = vmatprep.subr.bf16.mxu1 %v1972_v45  ;;  %v686_v41 = vld [vmem:[#allocation3 + $0x3a8] sm:$0xff]  ;;  %v1862_v44 = vpack.c.bf16 %v677_v32, %v673_v30  ;;  %v1990_v45 = vpack.c.bf16 %v679_v38, %v675_v37  ;;  %v716_v30 = vld [vmem:[#allocation3 + $0x498] sm:$0xff]  ;;  %v713_v38 = vld [vmem:[#allocation3 + $0x480] sm:$0xff] }
 0x230   :  { %v1864_v48 = vpack.c.bf16 %v686_v41, %v682_v40  ;;  %v720_v32 = vld [vmem:[#allocation3 + $0x4b8] sm:$0xff]  ;;  %v717_v40 = vld [vmem:[#allocation3 + $0x4a0] sm:$0xff]  ;;  %v715_v41 = vld [vmem:[#allocation3 + $0x490] sm:$0xff] }
 0x231   :  { %v2008_v42 = vpack.c.bf16 %v720_v32, %v716_v30  ;;  %v746_v20 = vld [vmem:[#allocation3 + $0x588] sm:$0xff] }
 0x232   :  { %1847 = vmatpush1.bf16.msra.mxu0 %v1846_v52  ;;  %1975 = vmatpush1.bf16.msra.mxu1 %v1974_v53  ;;  %v690_v52 = vld [vmem:[#allocation3 + $0x3c8] sm:$0xff] }
 0x233   :  { %1849 = vmatprep.subr.bf16.mxu0 %v1848_v56  ;;  %1977 = vmatprep.subr.bf16.mxu1 %v1976_v57  ;;  %v694_v53 = vld [vmem:[#allocation3 + $0x3e8] sm:$0xff]  ;;  %v1866_v56 = vpack.c.bf16 %v685_v47, %v681_v46  ;;  %v1994_v57 = vpack.c.bf16 %v687_v51, %v683_v50  ;;  %v728_v46 = vld [vmem:[#allocation3 + $0x4f8] sm:$0xff]  ;;  %v1882_v47 = vpack.c.bf16 %v717_v40, %v713_v38  ;;  %v725_v50 = vld [vmem:[#allocation3 + $0x4e0] sm:$0xff] }
 0x234   :  { %v1868_v60 = vpack.c.bf16 %v694_v53, %v690_v52  ;;  %v723_v51 = vld [vmem:[#allocation3 + $0x4d0] sm:$0xff]  ;;  %v750_v21 = vld [vmem:[#allocation3 + $0x5a8] sm:$0xff] }
 0x235   :  { %v727_v53 = vld [vmem:[#allocation3 + $0x4f0] sm:$0xff]  ;;  %v754_v30 = vld [vmem:[#allocation3 + $0x5c8] sm:$0xff] }
 0x236   :  { %1851 = vmatpush1.bf16.msra.mxu0 %v1850_v0  ;;  %1979 = vmatpush1.bf16.msra.mxu1 %v1978_v2  ;;  %v698_v0 = vld [vmem:[#allocation3 + $0x408] sm:$0xff] }
 0x237   :  { %1853 = vmatprep.subr.bf16.mxu0 %v1852_v5  ;;  %1981 = vmatprep.subr.bf16.mxu1 %v1980_v6  ;;  %v702_v2 = vld [vmem:[#allocation3 + $0x428] sm:$0xff]  ;;  %v1870_v5 = vpack.c.bf16 %v693_v59, %v689_v58  ;;  %v1998_v6 = vpack.c.bf16 %v695_v63, %v691_v62  ;;  %v2014_v59 = vpack.c.bf16 %v727_v53, %v723_v51  ;;  %v733_v62 = vld [vmem:[#allocation3 + $0x520] sm:$0xff]  ;;  %v731_v63 = vld [vmem:[#allocation3 + $0x510] sm:$0xff] }
 0x238   :  { %v1872_v7 = vpack.c.bf16 %v702_v2, %v698_v0  ;;  %v735_v2 = vld [vmem:[#allocation3 + $0x530] sm:$0xff]  ;;  %v758_v32 = vld [vmem:[#allocation3 + $0x5e8] sm:$0xff]  ;;  %v761_v51 = vld [vmem:[#allocation3 + $0x600] sm:$0xff] }
 0x239   :  { %v1900_v40 = vpack.c.bf16 %v758_v32, %v754_v30  ;;  %v763_v53 = vld [vmem:[#allocation3 + $0x610] sm:$0xff] }
 0x23a   :  { %1855 = vmatpush1.bf16.msra.mxu0 %v1854_v18  ;;  %1983 = vmatpush1.bf16.msra.mxu1 %v1982_v19  ;;  %v706_v18 = vld [vmem:[#allocation3 + $0x448] sm:$0xff]  ;;  %v791_v32 = vld [vmem:[#allocation3 + $0x6f0] sm:$0xff] }
 0x23b   :  { %1857 = vmatprep.subr.bf16.mxu0 %v1856_v22  ;;  %1985 = vmatprep.subr.bf16.mxu1 %v1984_v23  ;;  %v710_v19 = vld [vmem:[#allocation3 + $0x468] sm:$0xff]  ;;  %v1874_v22 = vpack.c.bf16 %v701_v12, %v697_v9  ;;  %v2002_v23 = vpack.c.bf16 %v703_v17, %v699_v16  ;;  %v1892_v9 = vpack.c.bf16 %v742_v4, %v738_v3  ;;  %v737_v12 = vld [vmem:[#allocation3 + $0x540] sm:$0xff]  ;;  %v739_v17 = vld [vmem:[#allocation3 + $0x550] sm:$0xff] }
 0x23c   :  { %v1876_v35 = vpack.c.bf16 %v710_v19, %v706_v18  ;;  %v741_v16 = vld [vmem:[#allocation3 + $0x560] sm:$0xff]  ;;  %v743_v19 = vld [vmem:[#allocation3 + $0x570] sm:$0xff] }
 0x23d   :  { %v775_v4 = vld [vmem:[#allocation3 + $0x670] sm:$0xff] }
 0x23e   :  { %1859 = vmatpush1.bf16.msra.mxu0 %v1858_v28  ;;  %1987 = vmatpush1.bf16.msra.mxu1 %v1986_v29  ;;  %v714_v28 = vld [vmem:[#allocation3 + $0x488] sm:$0xff] }
 0x23f   :  { %1861 = vmatprep.subr.bf16.mxu0 %v1860_v33  ;;  %1989 = vmatprep.subr.bf16.mxu1 %v1988_v36  ;;  %v718_v29 = vld [vmem:[#allocation3 + $0x4a8] sm:$0xff]  ;;  %v1878_v33 = vpack.c.bf16 %v709_v1, %v705_v24  ;;  %v2006_v36 = vpack.c.bf16 %v711_v27, %v707_v25  ;;  %v1894_v24 = vpack.c.bf16 %v741_v16, %v737_v12  ;;  %v747_v27 = vld [vmem:[#allocation3 + $0x590] sm:$0xff] }
 0x240   :  { %v1880_v37 = vpack.c.bf16 %v718_v29, %v714_v28  ;;  %v2022_v1 = vpack.c.bf16 %v743_v19, %v739_v17  ;;  %v1896_v25 = vpack.c.bf16 %v750_v21, %v746_v20  ;;  %v751_v29 = vld [vmem:[#allocation3 + $0x5b0] sm:$0xff]  ;;  %v777_v17 = vld [vmem:[#allocation3 + $0x680] sm:$0xff] }
 0x241   :  { %v2026_v38 = vpack.c.bf16 %v751_v29, %v747_v27  ;;  %v779_v19 = vld [vmem:[#allocation3 + $0x690] sm:$0xff]  ;;  %v785_v27 = vld [vmem:[#allocation3 + $0x6c0] sm:$0xff] }
 0x242   :  { %1863 = vmatpush1.bf16.msra.mxu0 %v1862_v44  ;;  %1991 = vmatpush1.bf16.msra.mxu1 %v1990_v45  ;;  %v722_v44 = vld [vmem:[#allocation3 + $0x4c8] sm:$0xff]  ;;  %v724_v45 = vld [vmem:[#allocation3 + $0x4d8] sm:$0xff]  ;;  %v783_v21 = vld [vmem:[#allocation3 + $0x6b0] sm:$0xff] }
 0x243   :  { %1865 = vmatprep.subr.bf16.mxu0 %v1864_v48  ;;  %1993 = vmatprep.subr.bf16.mxu1 %v1992_v49  ;;  %v2010_v48 = vpack.c.bf16 %v719_v43, %v715_v41  ;;  %v2012_v52 = vpack.c.bf16 %v728_v46, %v724_v45  ;;  %v753_v41 = vld [vmem:[#allocation3 + $0x5c0] sm:$0xff]  ;;  %v755_v43 = vld [vmem:[#allocation3 + $0x5d0] sm:$0xff]  ;;  %v762_v45 = vld [vmem:[#allocation3 + $0x608] sm:$0xff] }
 0x244   :  { %v766_v46 = vld [vmem:[#allocation3 + $0x628] sm:$0xff]  ;;  %v787_v29 = vld [vmem:[#allocation3 + $0x6d0] sm:$0xff] }
 0x246   :  { %1867 = vmatpush1.bf16.msra.mxu0 %v1866_v56  ;;  %1995 = vmatpush1.bf16.msra.mxu1 %v1994_v57  ;;  %v732_v56 = vld [vmem:[#allocation3 + $0x518] sm:$0xff] }
 0x247   :  { %1869 = vmatprep.subr.bf16.mxu0 %v1868_v60  ;;  %1997 = vmatprep.subr.bf16.mxu1 %v1996_v61  ;;  %v736_v57 = vld [vmem:[#allocation3 + $0x538] sm:$0xff]  ;;  %v1888_v60 = vpack.c.bf16 %v734_v55, %v730_v54  ;;  %v729_v61 = vld [vmem:[#allocation3 + $0x500] sm:$0xff]  ;;  %v767_v55 = vld [vmem:[#allocation3 + $0x630] sm:$0xff] }
 0x248   :  { %v2016_v0 = vpack.c.bf16 %v736_v57, %v732_v56  ;;  %v770_v56 = vld [vmem:[#allocation3 + $0x648] sm:$0xff] }
 0x249   :  { %v774_v57 = vld [vmem:[#allocation3 + $0x668] sm:$0xff] }
 0x24a   :  { %1871 = vmatpush1.bf16.msra.mxu0 %v1870_v5  ;;  %1999 = vmatpush1.bf16.msra.mxu1 %v1998_v6  ;;  %v740_v5 = vld [vmem:[#allocation3 + $0x558] sm:$0xff] }
 0x24b   :  { %1873 = vmatprep.subr.bf16.mxu0 %v1872_v7  ;;  %2001 = vmatprep.subr.bf16.mxu1 %v2000_v8  ;;  %v744_v6 = vld [vmem:[#allocation3 + $0x578] sm:$0xff]  ;;  %v1890_v7 = vpack.c.bf16 %v733_v62, %v729_v61  ;;  %v2018_v8 = vpack.c.bf16 %v735_v2, %v731_v63  ;;  %v2034_v61 = vpack.c.bf16 %v767_v55, %v763_v53  ;;  %v769_v63 = vld [vmem:[#allocation3 + $0x640] sm:$0xff]  ;;  %v771_v2 = vld [vmem:[#allocation3 + $0x650] sm:$0xff] }
 0x24c   :  { %v2020_v18 = vpack.c.bf16 %v744_v6, %v740_v5  ;;  %v1908_v62 = vpack.c.bf16 %v774_v57, %v770_v56  ;;  %v778_v5 = vld [vmem:[#allocation3 + $0x688] sm:$0xff]  ;;  %v2038_v12 = vpack.c.bf16 %v775_v4, %v771_v2  ;;  %v801_v53 = vld [vmem:[#allocation3 + $0x740] sm:$0xff]  ;;  %v803_v55 = vld [vmem:[#allocation3 + $0x750] sm:$0xff] }
 0x24d   :  { %1060 = vmatmul.mubr.f32.vlgmr.msra.gmra.mrb[6].mxu0 %v2542_v31  ;;  %1202 = vmatmul.mubr.f32.vlgmr.msra.gmra.mrb[6].mxu1 %v2542_v31  ;;  %v726_v31 = vld [vmem:[#allocation3 + $0x4e8] sm:$0xff]  ;;  %v807_v57 = vld [vmem:[#allocation3 + $0x770] sm:$0xff]  ;;  %v809_v2 = vld [vmem:[#allocation3 + $0x780] sm:$0xff] }
 0x24e   :  { %1875 = vmatpush1.bf16.msra.mxu0 %v1874_v22  ;;  %1130 = vmatprep.mubr.f32.mxu0 %v2554_v39  ;;  %v1884_v49 = vpack.c.bf16 %v726_v31, %v722_v44  ;;  %v748_v22 = vld [vmem:[#allocation3 + $0x598] sm:$0xff]  ;;  %v759_v31 = vld [vmem:[#allocation3 + $0x5f0] sm:$0xff]  ;;  %v782_v6 = vld [vmem:[#allocation3 + $0x6a8] sm:$0xff] }
 0x24f   :  { %2003 = vmatpush1.bf16.msra.mxu1 %v2002_v23  ;;  %1272 = vmatprep.mubr.f32.mxu1 %v2554_v39  ;;  %v721_v39 = vld [vmem:[#allocation3 + $0x4c0] sm:$0xff]  ;;  %v752_v23 = vld [vmem:[#allocation3 + $0x5b8] sm:$0xff]  ;;  %v1912_v16 = vpack.c.bf16 %v782_v6, %v778_v5  ;;  %v811_v4 = vld [vmem:[#allocation3 + $0x790] sm:$0xff] }
 0x250   :  { %1877 = vmatprep.subr.bf16.mxu0 %v1876_v35  ;;  %2005 = vmatprep.subr.bf16.mxu1 %v2004_v26  ;;  %v1886_v58 = vpack.c.bf16 %v725_v50, %v721_v39  ;;  %v745_v35 = vld [vmem:[#allocation3 + $0x580] sm:$0xff]  ;;  %v2024_v28 = vpack.c.bf16 %v752_v23, %v748_v22  ;;  %v2030_v39 = vpack.c.bf16 %v759_v31, %v755_v43  ;;  %v786_v22 = vld [vmem:[#allocation3 + $0x6c8] sm:$0xff]  ;;  %v795_v31 = vld [vmem:[#allocation3 + $0x710] sm:$0xff] }
 0x251   :  { %v749_v26 = vld [vmem:[#allocation3 + $0x5a0] sm:$0xff]  ;;  %v1904_v50 = vpack.c.bf16 %v766_v46, %v762_v45  ;;  %v790_v23 = vld [vmem:[#allocation3 + $0x6e8] sm:$0xff]  ;;  %v799_v46 = vld [vmem:[#allocation3 + $0x730] sm:$0xff] }
 0x252   :  { %1879 = vmatpush1.bf16.msra.mxu0 %v1878_v33  ;;  %v756_v33 = vld [vmem:[#allocation3 + $0x5d8] sm:$0xff]  ;;  %v793_v43 = vld [vmem:[#allocation3 + $0x700] sm:$0xff]  ;;  %v815_v6 = vld [vmem:[#allocation3 + $0x7b0] sm:$0xff] }
 0x253   :  { %2007 = vmatpush1.bf16.msra.mxu1 %v2006_v36  ;;  %1881 = vmatprep.subr.bf16.mxu0 %v1880_v37  ;;  %v760_v36 = vld [vmem:[#allocation3 + $0x5f8] sm:$0xff]  ;;  %v1898_v37 = vpack.c.bf16 %v749_v26, %v745_v35  ;;  %v2042_v35 = vpack.c.bf16 %v783_v21, %v779_v19  ;;  %v1916_v26 = vpack.c.bf16 %v790_v23, %v786_v22  ;;  %v817_v19 = vld [vmem:[#allocation3 + $0x7c0] sm:$0xff]  ;;  %v819_v21 = vld [vmem:[#allocation3 + $0x7d0] sm:$0xff] }
 0x254   :  { %2009 = vmatprep.subr.bf16.mxu1 %v2008_v42  ;;  %v757_v42 = vld [vmem:[#allocation3 + $0x5e0] sm:$0xff]  ;;  %v2028_v44 = vpack.c.bf16 %v760_v36, %v756_v33  ;;  %v794_v33 = vld [vmem:[#allocation3 + $0x708] sm:$0xff]  ;;  %v823_v23 = vld [vmem:[#allocation3 + $0x7f0] sm:$0xff] }
 0x255   :  { %v798_v36 = vld [vmem:[#allocation3 + $0x728] sm:$0xff] }
 0x256   :  { %1883 = vmatpush1.bf16.msra.mxu0 %v1882_v47  ;;  %v764_v47 = vld [vmem:[#allocation3 + $0x618] sm:$0xff] }
 0x257   :  { %2011 = vmatpush1.bf16.msra.mxu1 %v2010_v48  ;;  %1885 = vmatprep.subr.bf16.mxu0 %v1884_v49  ;;  %v768_v48 = vld [vmem:[#allocation3 + $0x638] sm:$0xff]  ;;  %v1902_v49 = vpack.c.bf16 %v757_v42, %v753_v41  ;;  %v2046_v41 = vpack.c.bf16 %v791_v32, %v787_v29  ;;  %v1920_v42 = vpack.c.bf16 %v798_v36, %v794_v33  ;;  %v1350_v36 = vld [vmem:[%s2823_s7 + $0x108] sm:$0xff] }
 0x258   :  { %2013 = vmatprep.subr.bf16.mxu1 %v2012_v52  ;;  %v765_v52 = vld [vmem:[#allocation3 + $0x620] sm:$0xff]  ;;  %v2032_v54 = vpack.c.bf16 %v768_v48, %v764_v47  ;;  %v802_v47 = vld [vmem:[#allocation3 + $0x748] sm:$0xff] }
 0x259   :  { %v806_v48 = vld [vmem:[#allocation3 + $0x768] sm:$0xff]  ;;  %v1317_v29 = vld [vmem:[%s2823_s7] sm:$0xff] }
 0x25a   :  { %1887 = vmatpush1.bf16.msra.mxu0 %v1886_v58  ;;  %v772_v58 = vld [vmem:[#allocation3 + $0x658] sm:$0xff] }
 0x25b   :  { %2015 = vmatpush1.bf16.msra.mxu1 %v2014_v59  ;;  %1889 = vmatprep.subr.bf16.mxu0 %v1888_v60  ;;  %v776_v59 = vld [vmem:[#allocation3 + $0x678] sm:$0xff]  ;;  %v1906_v60 = vpack.c.bf16 %v765_v52, %v761_v51  ;;  %v2050_v51 = vpack.c.bf16 %v799_v46, %v795_v31  ;;  %v1924_v52 = vpack.c.bf16 %v806_v48, %v802_v47  ;;  %v1319_v31 = vld [vmem:[%s2823_s7 + $0x10] sm:$0xff] }
 0x25c   :  { %2017 = vmatprep.subr.bf16.mxu1 %v2016_v0  ;;  %v773_v0 = vld [vmem:[#allocation3 + $0x660] sm:$0xff]  ;;  %v2036_v3 = vpack.c.bf16 %v776_v59, %v772_v58  ;;  %v810_v58 = vld [vmem:[#allocation3 + $0x788] sm:$0xff]  ;;  %v1352_v48 = vld [vmem:[%s2823_s7 + $0x118] sm:$0xff] }
 0x25d   :  { %v814_v59 = vld [vmem:[#allocation3 + $0x7a8] sm:$0xff]  ;;  %v1349_v32 = vld [vmem:[%s2823_s7 + $0x100] sm:$0xff] }
 0x25e   :  { %1891 = vmatpush1.bf16.msra.mxu0 %v1890_v7  ;;  %v780_v7 = vld [vmem:[#allocation3 + $0x698] sm:$0xff]  ;;  %v1351_v46 = vld [vmem:[%s2823_s7 + $0x110] sm:$0xff] }
 0x25f   :  { %2019 = vmatpush1.bf16.msra.mxu1 %v2018_v8  ;;  %1893 = vmatprep.subr.bf16.mxu0 %v1892_v9  ;;  %v784_v8 = vld [vmem:[#allocation3 + $0x6b8] sm:$0xff]  ;;  %v1910_v9 = vpack.c.bf16 %v773_v0, %v769_v63  ;;  %v2054_v63 = vpack.c.bf16 %v807_v57, %v803_v55  ;;  %v1928_v0 = vpack.c.bf16 %v814_v59, %v810_v58  ;;  %v1354_v58 = vld [vmem:[%s2823_s7 + $0x128] sm:$0xff]  ;;  %v1339_v59 = vld [vmem:[%s2823_s7 + $0xb0] sm:$0xff] }
 0x260   :  { %2021 = vmatprep.subr.bf16.mxu1 %v2020_v18  ;;  %v781_v18 = vld [vmem:[#allocation3 + $0x6a0] sm:$0xff]  ;;  %v2040_v20 = vpack.c.bf16 %v784_v8, %v780_v7  ;;  %v818_v7 = vld [vmem:[#allocation3 + $0x7c8] sm:$0xff] }
 0x261   :  { %v822_v8 = vld [vmem:[#allocation3 + $0x7e8] sm:$0xff]  ;;  %v1321_v55 = vld [vmem:[%s2823_s7 + $0x20] sm:$0xff] }
 0x262   :  { %1895 = vmatpush1.bf16.msra.mxu0 %v1894_v24  ;;  %v788_v24 = vld [vmem:[#allocation3 + $0x6d8] sm:$0xff] }
 0x263   :  { %2023 = vmatpush1.bf16.msra.mxu1 %v2022_v1  ;;  %1897 = vmatprep.subr.bf16.mxu0 %v1896_v25  ;;  %v792_v1 = vld [vmem:[#allocation3 + $0x6f8] sm:$0xff]  ;;  %v1914_v25 = vpack.c.bf16 %v781_v18, %v777_v17  ;;  %v2058_v17 = vpack.c.bf16 %v815_v6, %v811_v4  ;;  %v1932_v18 = vpack.c.bf16 %v822_v8, %v818_v7 }
 0x264   :  { %2025 = vmatprep.subr.bf16.mxu1 %v2024_v28  ;;  %v789_v28 = vld [vmem:[#allocation3 + $0x6e0] sm:$0xff]  ;;  %v2044_v30 = vpack.c.bf16 %v792_v1, %v788_v24  ;;  %v1324_v4 = vld [vmem:[%s2823_s7 + $0x38] sm:$0xff] }
 0x265   :  { %v1333_v24 = vld [vmem:[%s2823_s7 + $0x80] sm:$0xff]  ;;  %v1334_v1 = vld [vmem:[%s2823_s7 + $0x88] sm:$0xff]  ;;  %v1356_v7 = vld [vmem:[%s2823_s7 + $0x138] sm:$0xff] }
 0x266   :  { %1899 = vmatpush1.bf16.msra.mxu0 %v1898_v37  ;;  %v796_v37 = vld [vmem:[#allocation3 + $0x718] sm:$0xff] }
 0x267   :  { %2027 = vmatpush1.bf16.msra.mxu1 %v2026_v38  ;;  %1901 = vmatprep.subr.bf16.mxu0 %v1900_v40  ;;  %v800_v38 = vld [vmem:[#allocation3 + $0x738] sm:$0xff]  ;;  %v1918_v40 = vpack.c.bf16 %v789_v28, %v785_v27  ;;  %v2062_v27 = vpack.c.bf16 %v823_v23, %v819_v21  ;;  %v2064_v28 = vpack.c.bf16 %v1334_v1, %v1333_v24  ;;  %v1326_v21 = vld [vmem:[%s2823_s7 + $0x48] sm:$0xff]  ;;  %v1343_v1 = vld [vmem:[%s2823_s7 + $0xd0] sm:$0xff] }
 0x268   :  { %2029 = vmatprep.subr.bf16.mxu1 %v2028_v44  ;;  %v797_v44 = vld [vmem:[#allocation3 + $0x720] sm:$0xff]  ;;  %v2048_v45 = vpack.c.bf16 %v800_v38, %v796_v37  ;;  %v1335_v37 = vld [vmem:[%s2823_s7 + $0x90] sm:$0xff]  ;;  %v1336_v38 = vld [vmem:[%s2823_s7 + $0x98] sm:$0xff] }
 0x269   :  { %v1353_v57 = vld [vmem:[%s2823_s7 + $0x120] sm:$0xff]  ;;  %v1358_v24 = vld [vmem:[%s2823_s7 + $0x148] sm:$0xff] }
 0x26a   :  { %1903 = vmatpush1.bf16.msra.mxu0 %v1902_v49  ;;  %v804_v49 = vld [vmem:[#allocation3 + $0x758] sm:$0xff] }
 0x26b   :  { %2031 = vmatpush1.bf16.msra.mxu1 %v2030_v39  ;;  %1905 = vmatprep.subr.bf16.mxu0 %v1904_v50  ;;  %v808_v39 = vld [vmem:[#allocation3 + $0x778] sm:$0xff]  ;;  %v1922_v50 = vpack.c.bf16 %v797_v44, %v793_v43  ;;  %v2098_v43 = vpack.c.bf16 %v1350_v36, %v1349_v32  ;;  %v2068_v44 = vpack.c.bf16 %v1336_v38, %v1335_v37  ;;  %v1359_v36 = vld [vmem:[%s2823_s7 + $0x150] sm:$0xff] }
 0x26c   :  { %2033 = vmatprep.subr.bf16.mxu1 %v2032_v54  ;;  %v805_v54 = vld [vmem:[#allocation3 + $0x760] sm:$0xff]  ;;  %v2052_v56 = vpack.c.bf16 %v808_v39, %v804_v49  ;;  %v1328_v32 = vld [vmem:[%s2823_s7 + $0x58] sm:$0xff] }
 0x26d   :  { %v1337_v49 = vld [vmem:[%s2823_s7 + $0xa0] sm:$0xff]  ;;  %v1338_v39 = vld [vmem:[%s2823_s7 + $0xa8] sm:$0xff]  ;;  %v1360_v37 = vld [vmem:[%s2823_s7 + $0x158] sm:$0xff] }
 0x26e   :  { %1907 = vmatpush1.bf16.msra.mxu0 %v1906_v60  ;;  %v812_v60 = vld [vmem:[#allocation3 + $0x798] sm:$0xff] }
 0x26f   :  { %2035 = vmatpush1.bf16.msra.mxu1 %v2034_v61  ;;  %1909 = vmatprep.subr.bf16.mxu0 %v1908_v62  ;;  %v816_v61 = vld [vmem:[#allocation3 + $0x7b8] sm:$0xff]  ;;  %v1926_v62 = vpack.c.bf16 %v805_v54, %v801_v53  ;;  %v2102_v53 = vpack.c.bf16 %v1352_v48, %v1351_v46  ;;  %v2072_v54 = vpack.c.bf16 %v1338_v39, %v1337_v49  ;;  %v1378_v48 = vld [vmem:[%s2823_s7 + $0x1e8] sm:$0xff] }
 0x270   :  { %2037 = vmatprep.subr.bf16.mxu1 %v2036_v3  ;;  %v813_v3 = vld [vmem:[#allocation3 + $0x7a0] sm:$0xff]  ;;  %v2056_v5 = vpack.c.bf16 %v816_v61, %v812_v60  ;;  %v1340_v60 = vld [vmem:[%s2823_s7 + $0xb8] sm:$0xff]  ;;  %v1371_v61 = vld [vmem:[%s2823_s7 + $0x1b0] sm:$0xff] }
 0x271   :  { %v1341_v8 = vld [vmem:[%s2823_s7 + $0xc0] sm:$0xff] }
 0x272   :  { %1911 = vmatpush1.bf16.msra.mxu0 %v1910_v9  ;;  %v820_v9 = vld [vmem:[#allocation3 + $0x7d8] sm:$0xff] }
 0x273   :  { %2039 = vmatpush1.bf16.msra.mxu1 %v2038_v12  ;;  %1913 = vmatprep.subr.bf16.mxu0 %v1912_v16  ;;  %v824_v12 = vld [vmem:[#allocation3 + $0x7f8] sm:$0xff]  ;;  %v1930_v16 = vpack.c.bf16 %v813_v3, %v809_v2  ;;  %v2076_v2 = vpack.c.bf16 %v1340_v60, %v1339_v59  ;;  %v1323_v3 = vld [vmem:[%s2823_s7 + $0x30] sm:$0xff] }
 0x274   :  { %2041 = vmatprep.subr.bf16.mxu1 %v2040_v20  ;;  %v821_v20 = vld [vmem:[#allocation3 + $0x7e0] sm:$0xff]  ;;  %v2060_v22 = vpack.c.bf16 %v824_v12, %v820_v9  ;;  %v1331_v59 = vld [vmem:[%s2823_s7 + $0x70] sm:$0xff]  ;;  %v1332_v60 = vld [vmem:[%s2823_s7 + $0x78] sm:$0xff] }
 0x275   :  { %v1342_v9 = vld [vmem:[%s2823_s7 + $0xc8] sm:$0xff]  ;;  %v1373_v12 = vld [vmem:[%s2823_s7 + $0x1c0] sm:$0xff] }
 0x276   :  { %1915 = vmatpush1.bf16.msra.mxu0 %v1914_v25  ;;  %v1365_v25 = vld [vmem:[%s2823_s7 + $0x180] sm:$0xff] }
 0x277   :  { %2043 = vmatpush1.bf16.msra.mxu1 %v2042_v35  ;;  %1917 = vmatprep.subr.bf16.mxu0 %v1916_v26  ;;  %v1366_v35 = vld [vmem:[%s2823_s7 + $0x188] sm:$0xff]  ;;  %v1934_v26 = vpack.c.bf16 %v821_v20, %v817_v19  ;;  %v2080_v19 = vpack.c.bf16 %v1342_v9, %v1341_v8  ;;  %v1325_v20 = vld [vmem:[%s2823_s7 + $0x40] sm:$0xff] }
 0x278   :  { %2045 = vmatprep.subr.bf16.mxu1 %v2044_v30  ;;  %v1318_v30 = vld [vmem:[%s2823_s7 + $0x8] sm:$0xff]  ;;  %v2096_v33 = vpack.c.bf16 %v1366_v35, %v1365_v25  ;;  %v1344_v25 = vld [vmem:[%s2823_s7 + $0xd8] sm:$0xff]  ;;  %v1375_v35 = vld [vmem:[%s2823_s7 + $0x1d0] sm:$0xff] }
 0x279   :  { %v1329_v49 = vld [vmem:[%s2823_s7 + $0x60] sm:$0xff] }
 0x27a   :  { %1919 = vmatpush1.bf16.msra.mxu0 %v1918_v40  ;;  %v1367_v40 = vld [vmem:[%s2823_s7 + $0x190] sm:$0xff] }
 0x27b   :  { %2047 = vmatpush1.bf16.msra.mxu1 %v2046_v41  ;;  %1921 = vmatprep.subr.bf16.mxu0 %v1920_v42  ;;  %v1368_v41 = vld [vmem:[%s2823_s7 + $0x198] sm:$0xff]  ;;  %v2066_v42 = vpack.c.bf16 %v1318_v30, %v1317_v29  ;;  %v2084_v29 = vpack.c.bf16 %v1344_v25, %v1343_v1  ;;  %v1327_v30 = vld [vmem:[%s2823_s7 + $0x50] sm:$0xff] }
 0x27c   :  { %2049 = vmatprep.subr.bf16.mxu1 %v2048_v45  ;;  %v1320_v45 = vld [vmem:[%s2823_s7 + $0x18] sm:$0xff]  ;;  %v2100_v47 = vpack.c.bf16 %v1368_v41, %v1367_v40  ;;  %v2086_v38 = vpack.c.bf16 %v1328_v32, %v1327_v30  ;;  %v2118_v40 = vpack.c.bf16 %v1360_v37, %v1359_v36 }
 0x27e   :  { %1923 = vmatpush1.bf16.msra.mxu0 %v1922_v50  ;;  %v1369_v50 = vld [vmem:[%s2823_s7 + $0x1a0] sm:$0xff] }
 0x27f   :  { %2051 = vmatpush1.bf16.msra.mxu1 %v2050_v51  ;;  %1925 = vmatprep.subr.bf16.mxu0 %v1924_v52  ;;  %v1370_v51 = vld [vmem:[%s2823_s7 + $0x1a8] sm:$0xff]  ;;  %v2070_v52 = vpack.c.bf16 %v1320_v45, %v1319_v31  ;;  %v1345_v31 = vld [vmem:[%s2823_s7 + $0xe0] sm:$0xff] }
 0x280   :  { %2053 = vmatprep.subr.bf16.mxu1 %v2052_v56  ;;  %v1322_v56 = vld [vmem:[%s2823_s7 + $0x28] sm:$0xff] }
 0x281   :  { %v1346_v45 = vld [vmem:[%s2823_s7 + $0xe8] sm:$0xff] }
 0x282   :  { %1927 = vmatpush1.bf16.msra.mxu0 %v1926_v62  ;;  %v1372_v62 = vld [vmem:[%s2823_s7 + $0x1b8] sm:$0xff]  ;;  %v2088_v46 = vpack.c.bf16 %v1346_v45, %v1345_v31 }
 0x283   :  { %2055 = vmatpush1.bf16.msra.mxu1 %v2054_v63  ;;  %1929 = vmatprep.subr.bf16.mxu0 %v1928_v0  ;;  %v2074_v63 = vpack.c.bf16 %v1322_v56, %v1321_v55  ;;  %v2106_v0 = vpack.c.bf16 %v1354_v58, %v1353_v57  ;;  %v2108_v6 = vpack.c.bf16 %v1372_v62, %v1371_v61  ;;  %v1347_v55 = vld [vmem:[%s2823_s7 + $0xf0] sm:$0xff]  ;;  %v1348_v56 = vld [vmem:[%s2823_s7 + $0xf8] sm:$0xff] }
 0x284   :  { %2057 = vmatprep.subr.bf16.mxu1 %v2056_v5  ;;  %v1355_v5 = vld [vmem:[%s2823_s7 + $0x130] sm:$0xff]  ;;  %v1380_v58 = vld [vmem:[%s2823_s7 + $0x1f8] sm:$0xff]  ;;  %v2094_v62 = vpack.c.bf16 %v1332_v60, %v1331_v59 }
 0x285   :  { %v1379_v57 = vld [vmem:[%s2823_s7 + $0x1f0] sm:$0xff] }
 0x286   :  { %1931 = vmatpush1.bf16.msra.mxu0 %v1930_v16  ;;  %v1374_v16 = vld [vmem:[%s2823_s7 + $0x1c8] sm:$0xff]  ;;  %v2124_v61 = vpack.c.bf16 %v1380_v58, %v1379_v57 }
 0x287   :  { %2059 = vmatpush1.bf16.msra.mxu1 %v2058_v17  ;;  %1933 = vmatprep.subr.bf16.mxu0 %v1932_v18  ;;  %v2078_v17 = vpack.c.bf16 %v1324_v4, %v1323_v3  ;;  %v2110_v18 = vpack.c.bf16 %v1356_v7, %v1355_v5  ;;  %v2112_v23 = vpack.c.bf16 %v1374_v16, %v1373_v12  ;;  %v1279_v3 = vld [vmem:[%s2822_s6] sm:$0xf] }
 0x288   :  { %2061 = vmatprep.subr.bf16.mxu1 %v2060_v22  ;;  %v1357_v22 = vld [vmem:[%s2823_s7 + $0x140] sm:$0xff]  ;;  %v1284_v5 = vrot.slane %v1279_v3, %v2527_v11  ;;  %v1292_v9 = vrot.slane %v1279_v3, %v91_v13  ;;  %v1288_v12 = vrot.slane %v1279_v3, %v87_v14 }
 0x28a   :  { %1935 = vmatpush1.bf16.msra.mxu0 %v1934_v26  ;;  %v1376_v26 = vld [vmem:[%s2823_s7 + $0x1d8] sm:$0xff] }
 0x28b   :  { %2063 = vmatpush1.bf16.msra.mxu1 %v2062_v27  ;;  %2065 = vmatprep.subr.bf16.mxu0 %v2064_v28  ;;  %v2082_v27 = vpack.c.bf16 %v1326_v21, %v1325_v20  ;;  %v2114_v28 = vpack.c.bf16 %v1358_v24, %v1357_v22  ;;  %v1296_v20 = vrot.slane %v1279_v3, %v95_v15 }
 0x28c   :  { %2097 = vmatprep.subr.bf16.mxu1 %v2096_v33  ;;  %v2116_v33 = vpack.c.bf16 %v1376_v26, %v1375_v35 }
 0x28d   :  { %1131 = vmatmul.mubr.f32.vlgmr.msra.gmra.mrb[6].mxu0 %v2546_v34 }
 0x28e   :  { %1273 = vmatmul.mubr.f32.vlgmr.msra.gmra.mrb[6].mxu1 %v2546_v34  ;;  %2067 = vmatpush3.bf16.msra.mxu0 %v2066_v42  ;;  %v2104_v34 = vpack.c.bf16 %v1370_v51, %v1369_v50  ;;  %v1330_v50 = vld [vmem:[%s2823_s7 + $0x68] sm:$0xff]  ;;  %v1361_v51 = vld [vmem:[%s2823_s7 + $0x160] sm:$0xff] }
 0x28f   :  { %2099 = vmatpush3.bf16.msra.mxu1 %v2098_v43  ;;  %2069 = vmatprep.subr.bf16.mxu0 %v2068_v44 }
 0x290   :  { %2101 = vmatprep.subr.bf16.mxu1 %v2100_v47  ;;  %v1377_v47 = vld [vmem:[%s2823_s7 + $0x1e0] sm:$0xff] }
 0x291   :  { %v2120_v39 = vpack.c.bf16 %v1378_v48, %v1377_v47  ;;  %v1570_v47 = vld [vmem:[#allocation2] ss:$0 sm:$0xff] }
 0x292   :  { %2071 = vmatpush3.bf16.msra.mxu0 %v2070_v52  ;;  %v1362_v52 = vld [vmem:[%s2823_s7 + $0x168] sm:$0xff] }
 0x293   :  { %2103 = vmatpush3.bf16.msra.mxu1 %v2102_v53  ;;  %2073 = vmatprep.subr.bf16.mxu0 %v2072_v54  ;;  %v2090_v53 = vpack.c.bf16 %v1330_v50, %v1329_v49  ;;  %v2122_v54 = vpack.c.bf16 %v1362_v52, %v1361_v51 }
 0x294   :  { %2105 = vmatprep.subr.bf16.mxu1 %v2104_v34  ;;  %v2092_v34 = vpack.c.bf16 %v1348_v56, %v1347_v55 }
 0x296   :  { %2075 = vmatpush3.bf16.msra.mxu0 %v2074_v63  ;;  %v1363_v63 = vld [vmem:[%s2823_s7 + $0x170] sm:$0xff] }
 0x297   :  { %2107 = vmatpush3.bf16.msra.mxu1 %v2106_v0  ;;  %2077 = vmatprep.subr.bf16.mxu0 %v2076_v2  ;;  %v1364_v0 = vld [vmem:[%s2823_s7 + $0x178] sm:$0xff] }
 0x298   :  { %2109 = vmatprep.subr.bf16.mxu1 %v2108_v6  ;;  %v2126_v2 = vpack.c.bf16 %v1364_v0, %v1363_v63 }
 0x29a   :  { %2079 = vmatpush3.bf16.msra.mxu0 %v2078_v17 }
 0x29b   :  { %2111 = vmatpush3.bf16.msra.mxu1 %v2110_v18  ;;  %2081 = vmatprep.subr.bf16.mxu0 %v2080_v19 }
 0x29c   :  { %2113 = vmatprep.subr.bf16.mxu1 %v2112_v23 }
 0x29e   :  { %2083 = vmatpush3.bf16.msra.mxu0 %v2082_v27 }
 0x29f   :  { %2115 = vmatpush3.bf16.msra.mxu1 %v2114_v28  ;;  %2085 = vmatprep.subr.bf16.mxu0 %v2084_v29 }
 0x2a0   :  { %2117 = vmatprep.subr.bf16.mxu1 %v2116_v33  ;;  %v1568_v33 = vld [vmem:[%s2824_s8] ss:$0 sm:$0xff] }
 0x2a2   :  { %2087 = vmatpush3.bf16.msra.mxu0 %v2086_v38 }
 0x2a3   :  { %2119 = vmatpush3.bf16.msra.mxu1 %v2118_v40  ;;  %2089 = vmatprep.subr.bf16.mxu0 %v2088_v46 }
 0x2a4   :  { %2121 = vmatprep.subr.bf16.mxu1 %v2120_v39 }
 0x2a6   :  { %2091 = vmatpush3.bf16.msra.mxu0 %v2090_v53 }
 0x2a7   :  { %2123 = vmatpush3.bf16.msra.mxu1 %v2122_v54  ;;  %2093 = vmatprep.subr.bf16.mxu0 %v2092_v34 }
 0x2a8   :  { %2125 = vmatprep.subr.bf16.mxu1 %v2124_v61 }
 0x2aa   :  { %2095 = vmatpush3.bf16.msra.mxu0 %v2094_v62 }
 0x2ab   :  { %2127 = vmatpush3.bf16.msra.mxu1 %v2126_v2 }
 0x2e0   :  { %v903_v41 = vpop.f32.mrb[4].mxu0  ;;  %v974_v42 = vpop.f32.mrb[4].mxu1 }
 0x2e1   :  { %v905_v43 = vpop.f32.mrb[5].mxu0  ;;  %v976_v44 = vpop.f32.mrb[5].mxu1  ;;  %v982_v4 = vrot.slane %v903_v41, %v2527_v11  ;;  %v990_v6 = vrot.slane %v974_v42, %v2527_v11 }
 0x2e2   :  { %v986_v7 = vrot.slane %v905_v43, %v2527_v11  ;;  %v994_v16 = vrot.slane %v976_v44, %v2527_v11  ;;  %v1569_v44 = vld [vmem:[%s2825_s9] ss:$0 sm:$0xff] }
 0x360   :  { %v1132_v8 = vpop.f32.mrb[6].mxu0 }
 0x361   :  { %v2128_v17 = vadd.f32 %v1132_v8, %v982_v4  ;;  %v1274_v18 = vpop.f32.mrb[6].mxu1  ;;  %v1134_v19 = vpop.f32.mrb[7].mxu0 }
 0x362   :  { %v2130_v21 = vadd.f32 %v1274_v18, %v990_v6  ;;  %v2129_v22 = vadd.f32 %v1134_v19, %v986_v7  ;;  %v1276_v23 = vpop.f32.mrb[7].mxu1 }
 0x363   :  { %v1301_v24 = vadd.f32 %v2128_v17, %v1284_v5  ;;  %v2131_v1 = vadd.f32 %v1276_v23, %v994_v16 }
 0x364   :  { %v1303_v25 = vadd.f32 %v2130_v21, %v1292_v9  ;;  %v1302_v35 = vadd.f32 %v2129_v22, %v1288_v12 }
 0x365   :  { %v1309_v26 = vmul.f32 0.2, %v1301_v24  ;;  %v1304_v13 = vadd.f32 %v2131_v1, %v1296_v20  ;;  %vm1305_vm0 = vcmp.gt.f32.partialorder %v1301_v24, 0.0 }
 0x366   :  { %v1311_v27 = vmul.f32 0.2, %v1303_v25  ;;  %vm1306_vm15 = vcmp.gt.f32.partialorder %v1302_v35, 0.0  ;;  %v1310_v14 = vmul.f32 0.2, %v1302_v35  ;;  %vm1307_vm2 = vcmp.gt.f32.partialorder %v1303_v25, 0.0 }
 0x367   :  { %vm1308_vm1 = vcmp.gt.f32.partialorder %v1304_v13, 0.0  ;;  %v1312_v11 = vmul.f32 0.2, %v1304_v13  ;;  %v1313_v15 = vsel %vm1305_vm0, %v1301_v24, %v1309_v26 }
 0x368   :  { %v1314_v28 = vsel %vm1306_vm15, %v1302_v35, %v1310_v14  ;;  %v1315_v29 = vsel %vm1307_vm2, %v1303_v25, %v1311_v27 }
 0x369   :  { %1452 = vmatprep.mubr.f32.mxu0 %v1314_v28  ;;  %v1316_v10 = vsel %vm1308_vm1, %v1304_v13, %v1312_v11 }
 0x36a   :  { %1522 = vmatprep.mubr.f32.mxu1 %v1316_v10  ;;  %1453 = vmatmul.mubr.f32.vlgmr.msra.gmra.mrb[8].mxu0 %v1313_v15 }
 0x36b   :  { %1523 = vmatmul.mubr.f32.vlgmr.msra.gmra.mrb[8].mxu1 %v1315_v29 }
 0x43d   :  { %v1674_v30 = vpop.f32.mrb[8].mxu0 }
 0x43e   :  { %v1709_v32 = vpop.f32.mrb[8].mxu1  ;;  %v1675_v36 = vpop.f32.mrb[9].mxu0 }
 0x43f   :  { %v1676_v37 = vadd.f32 %v1675_v36, %v1674_v30  ;;  %v1710_v38 = vpop.f32.mrb[9].mxu1 }
 0x440   :  { %v1711_v40 = vadd.f32 %v1710_v38, %v1709_v32 }
 0x441   :  { %v1455_v41 = vadd.f32 %v1676_v37, %v1568_v33 }
 0x443   :  { %v1525_v42 = vadd.f32 %v1711_v40, %v1455_v41 }
 0x445   :  { %v1529_v43 = vmul.f32 0.2, %v1525_v42  ;;  %vm1528_vm3 = vcmp.gt.f32.partialorder %v1525_v42, 0.0 }
 0x447   :  { %v1530_v31 = vsel %vm1528_vm3, %v1525_v42, %v1529_v43 }
 0x448   :  { %v1538_v45 = vmul.f32 %v1569_v44, %v1530_v31 }
 0x44a   :  { %v1540_v46 = vsel %vm1539_vm4, %v1538_v45, 0.0 }
 0x44b   :  { %1541 = vadd.xlane.f32.xlu0 %v1540_v46 }
 0x4d8   :  { %v1542_v48 = vpop.xlane.xlu0 %1541 }
 0x4d9   :  { %v1550_v49 = vadd.f32 %v1570_v47, %v1542_v48 }
 0x4db   :  { %v1571_v39 = vmul.f32 -1.442695, %v1550_v49 }
 0x4dd   :  { %2148 = vpow2.f32 %v1571_v39 }
 0x4e7   :  { %v2149_v50 = vpop.eup %2148 }
 0x4e8   :  { %v1554_v51 = vadd.f32 1.0, %v2149_v50 }
 0x4ea   :  { %2150 = vrcp.f32 %v1554_v51 }
 0x4f4   :  { %v2151_v52 = vpop.eup %2150 }
 0x4f5   :  { %1558 = vst.msk [vmem:[%s2827_s11] sm:$0x3] %vm1557_vm5, %v2151_v52 }
 0x4f6   :  { %1563 = vsyncpa [#allocation4], 1 }

</bundles_post_ra>
